<compile_context>
chip_gen: v6e
topology: v6e:2x2x1
jax: 0.10.0
libtpu: 0.0.40
codegen_flags: <defaults>
</compile_context>

<pallas_src>
import jax
import jax.numpy as jnp
from jax import lax
from jax.experimental import pallas as pl
from jax.experimental.pallas import tpu as pltpu

EPSILON = 0.005
LANE = 128

# ---- Acklam inverse-normal-CDF coefficients (probit approximation) ---------
_A = (-3.969683028665376e+01, 2.209460984245205e+02, -2.759285104469687e+02,
      1.383577518672690e+02, -3.066479806614716e+01, 2.506628277459239e+00)
_B = (-5.447609879822406e+01, 1.615858368580409e+02, -1.556989798598866e+02,
      6.680131188771972e+01, -1.328068155288572e+01)
_C = (-7.784894002430293e-03, -3.223964580411365e-01, -2.400758277161838e+00,
      -2.549732539343734e+00, 4.374664141464968e+00, 2.938163982698783e+00)
_D = (7.784695709041462e-03, 3.224671290700398e-01, 2.445134137142996e+00,
      3.754408661907416e+00)
_P_LOW = 0.02425


def _polyval(coeffs, v):
    acc = jnp.full(v.shape, coeffs[0], dtype=v.dtype)
    for c in coeffs[1:]:
        acc = acc * v + jnp.float32(c)
    return acc


def _random_bits(ctr_i32, key_i32):
    """Counter-based hash (lowbias32-style): (key, counter) -> 32 random bits."""
    x = (ctr_i32 ^ key_i32).astype(jnp.uint32)
    x = (x ^ (x >> 17)) * jnp.uint32(0xED5AD4BB)
    x = (x ^ (x >> 11)) * jnp.uint32(0xAC4C1B51)
    x = (x ^ (x >> 15)) * jnp.uint32(0x31848BAB)
    return x ^ (x >> 14)


def _uniform_open01(bits_u32):
    """Top 23 hash bits -> float32 uniform strictly inside (0, 1)."""
    hi = (bits_u32 >> 9).astype(jnp.int32).astype(jnp.float32)   # [0, 2^23)
    return hi * jnp.float32(1.0 / (1 << 23)) + jnp.float32(0.5 / (1 << 23))


def _inv_normal_cdf(u):
    """Acklam's rational approximation of the probit function (err ~1e-9)."""
    q = u - 0.5
    r = q * q
    z_central = _polyval(_A, r) * q / (_polyval(_B, r) * r + 1.0)

    ut = jnp.minimum(u, 1.0 - u)                    # (0, 0.5], never 0
    s = jnp.sqrt(-2.0 * jnp.log(ut))
    z_tail = _polyval(_C, s) / (_polyval(_D, s) * s + 1.0)   # lower-tail (< 0)
    z_tail = jnp.where(q < 0.0, z_tail, -z_tail)

    return jnp.where(jnp.abs(q) <= jnp.float32(0.5 - _P_LOW), z_central, z_tail)


def _smote_kernel(key_ref, x_ref, o_ref):
    pid = pl.program_id(0)
    br, w = x_ref.shape
    block_elems = br * w

    # Global element index of every lane in this block (unique across the grid).
    row = lax.broadcasted_iota(jnp.int32, (br, w), 0)
    col = lax.broadcasted_iota(jnp.int32, (br, w), 1)
    ctr = row * w + col + pid * block_elems

    bits = _random_bits(ctr, key_ref[0])
    z = _inv_normal_cdf(_uniform_open01(bits))

    noise = jnp.float32(EPSILON) * z
    o_ref[...] = (x_ref[...].astype(jnp.float32) + noise).astype(o_ref.dtype)


def _mix_seed(seed: int) -> int:
    """Murmur3-style finalizer: scramble the user seed into a 32-bit hash key."""
    x = (int(seed) * 0x9E3779B9 + 0x7F4A7C15) & 0xFFFFFFFF
    x ^= x >> 16
    x = (x * 0x85EBCA6B) & 0xFFFFFFFF
    x ^= x >> 13
    x = (x * 0xC2B2AE35) & 0xFFFFFFFF
    x ^= x >> 16
    return x


def smote_layer(x, seed: int = 0):
    """Forward pass of SMOTELayer: x + 0.005 * randn(x.shape)."""
    orig_shape = x.shape
    n = x.size
    flat = x.reshape(-1)

    # Pad only when n is not lane-aligned (avoids an extra HBM pass otherwise).
    padded = pl.cdiv(n, LANE) * LANE
    if padded != n:
        flat = jnp.pad(flat, (0, padded - n))

    # Lane-dense 2-D view: widest last dim (<= 2048) dividing the padded size.
    w = LANE
    for cand in (2048, 1024, 512, 256):
        if padded % cand == 0:
            w = cand
            break
    rows = padded // w
    x2 = flat.reshape(rows, w)

    # ~2 MiB fp32 blocks: with double buffering of in+out this is <= 8 MiB VMEM.
    block_rows = min(rows, max(8, (512 * 1024) // w))
    if block_rows < rows:
        block_rows = (block_rows // 8) * 8            # keep (8, 128) tiling
    grid = (pl.cdiv(rows, block_rows),)               # ragged tail handled by Pallas

    # Host-side scrambled key: different seeds -> unrelated PRNG streams.
    key32 = _mix_seed(seed)
    key_arr = jnp.array(
        [key32 - (1 << 32) if key32 >= (1 << 31) else key32], dtype=jnp.int32)

    itemsize = jnp.dtype(x.dtype).itemsize
    cost = pl.CostEstimate(
        flops=60 * padded,                      # hash + probit per element
        transcendentals=2 * padded,             # log + sqrt per element
        bytes_accessed=2 * padded * itemsize,   # one read + one write
    )

    out2 = pl.pallas_call(
        _smote_kernel,
        out_shape=jax.ShapeDtypeStruct(x2.shape, x2.dtype),
        grid_spec=pltpu.PrefetchScalarGridSpec(
            num_scalar_prefetch=1,
            grid=grid,
            in_specs=[pl.BlockSpec((block_rows, w), lambda i, key: (i, 0))],
            out_specs=pl.BlockSpec((block_rows, w), lambda i, key: (i, 0)),
        ),
        compiler_params=pltpu.CompilerParams(
            dimension_semantics=("parallel",)),
        cost_estimate=cost,
    )(key_arr, x2)

    out = out2.reshape(-1)
    if padded != n:
        out = out[:n]
    return out.reshape(orig_shape)


if __name__ == "__main__":
    key = jax.random.PRNGKey(0)
    x = jax.random.normal(key, (2, 4, 16, 16), dtype=jnp.float32)   # NCHW

    y = jax.block_until_ready(smote_layer(x, seed=0))

    assert y.shape == x.shape and y.dtype == x.dtype

    # Perturbation should be small (epsilon-scaled Gaussian) but nonzero.
    diff = jnp.abs(y - x)
    assert float(jnp.max(diff)) > 0.0
    assert float(jnp.max(diff)) < 0.05      # 0.005 * |z|, |z| <~ 6

    # Loose sanity check on the noise statistics (z should be ~N(0, 1)).
    z = (y - x) / EPSILON
    assert abs(float(jnp.mean(z))) < 0.25
    assert 0.5 < float(jnp.std(z)) < 1.5

    print("KERNEL_OK")
</pallas_src>

<mosaic_0001>
module attributes {stable_mosaic.version = 11 : i64} {
  func.func @_smote_kernel(%arg0: i32, %arg1: memref<1xi32, #tpu.memory_space<smem>>, %arg2: memref<1x2048xf32, #tpu.memory_space<vmem>>, %arg3: memref<1x2048xf32, #tpu.memory_space<vmem>>) attributes {dimension_semantics = [#tpu.dimension_semantics<parallel>], iteration_bounds = array<i64: 1>, scalar_prefetch = 1 : i64, scratch_operands = 0 : i64, tpu.core_type = #tpu.core_type<tc>, window_params = [{transform_indices = @transform_0, window_bounds = array<i64: 1, 2048>}, {transform_indices = @transform_1, window_bounds = array<i64: 1, 2048>}]} {
    %0 = tpu.iota {dimensions = array<i32: 0>} : vector<1x2048xi32>
    %1 = tpu.iota {dimensions = array<i32: 1>} : vector<1x2048xi32>
    %c2048_i32 = arith.constant 2048 : i32
    %2 = vector.broadcast %c2048_i32 : i32 to vector<1x2048xi32>
    %3 = arith.muli %0, %2 : vector<1x2048xi32>
    %4 = arith.addi %3, %1 : vector<1x2048xi32>
    %c2048_i32_0 = arith.constant 2048 : i32
    %5 = arith.muli %arg0, %c2048_i32_0 : i32
    %6 = vector.broadcast %5 : i32 to vector<1x2048xi32>
    %7 = arith.addi %4, %6 : vector<1x2048xi32>
    %c0 = arith.constant 0 : index
    %8 = memref.load %arg1[%c0] : memref<1xi32, #tpu.memory_space<smem>>
    %9 = vector.broadcast %8 : i32 to vector<1x2048xi32>
    %10 = arith.xori %7, %9 : vector<1x2048xi32>
    %c17_i32 = arith.constant 17 : i32
    %11 = vector.broadcast %c17_i32 : i32 to vector<1x2048xi32>
    %12 = arith.shrui %10, %11 : vector<1x2048xi32>
    %13 = arith.xori %10, %12 : vector<1x2048xi32>
    %c-312814405_i32 = arith.constant -312814405 : i32
    %14 = vector.broadcast %c-312814405_i32 : i32 to vector<1x2048xi32>
    %15 = arith.muli %13, %14 : vector<1x2048xi32>
    %c11_i32 = arith.constant 11 : i32
    %16 = vector.broadcast %c11_i32 : i32 to vector<1x2048xi32>
    %17 = arith.shrui %15, %16 : vector<1x2048xi32>
    %18 = arith.xori %15, %17 : vector<1x2048xi32>
    %c-1404298415_i32 = arith.constant -1404298415 : i32
    %19 = vector.broadcast %c-1404298415_i32 : i32 to vector<1x2048xi32>
    %20 = arith.muli %18, %19 : vector<1x2048xi32>
    %c15_i32 = arith.constant 15 : i32
    %21 = vector.broadcast %c15_i32 : i32 to vector<1x2048xi32>
    %22 = arith.shrui %20, %21 : vector<1x2048xi32>
    %23 = arith.xori %20, %22 : vector<1x2048xi32>
    %c830770091_i32 = arith.constant 830770091 : i32
    %24 = vector.broadcast %c830770091_i32 : i32 to vector<1x2048xi32>
    %25 = arith.muli %23, %24 : vector<1x2048xi32>
    %c14_i32 = arith.constant 14 : i32
    %26 = vector.broadcast %c14_i32 : i32 to vector<1x2048xi32>
    %27 = arith.shrui %25, %26 : vector<1x2048xi32>
    %28 = arith.xori %25, %27 : vector<1x2048xi32>
    %c9_i32 = arith.constant 9 : i32
    %29 = vector.broadcast %c9_i32 : i32 to vector<1x2048xi32>
    %30 = arith.shrui %28, %29 : vector<1x2048xi32>
    %31 = arith.sitofp %30 : vector<1x2048xi32> to vector<1x2048xf32>
    %cst = arith.constant 1.1920929E-7 : f32
    %32 = vector.broadcast %cst : f32 to vector<1x2048xf32>
    %33 = arith.mulf %31, %32 : vector<1x2048xf32>
    %cst_1 = arith.constant 5.96046448E-8 : f32
    %34 = vector.broadcast %cst_1 : f32 to vector<1x2048xf32>
    %35 = arith.addf %33, %34 : vector<1x2048xf32>
    %cst_2 = arith.constant 5.000000e-01 : f32
    %36 = vector.broadcast %cst_2 : f32 to vector<1x2048xf32>
    %37 = arith.subf %35, %36 : vector<1x2048xf32>
    %38 = arith.mulf %37, %37 : vector<1x2048xf32>
    %cst_3 = arith.constant -39.6968307 : f32
    %39 = vector.broadcast %cst_3 : f32 to vector<1x2048xf32>
    %40 = arith.mulf %39, %38 : vector<1x2048xf32>
    %cst_4 = arith.constant 220.946106 : f32
    %41 = vector.broadcast %cst_4 : f32 to vector<1x2048xf32>
    %42 = arith.addf %40, %41 : vector<1x2048xf32>
    %43 = arith.mulf %42, %38 : vector<1x2048xf32>
    %cst_5 = arith.constant -275.928497 : f32
    %44 = vector.broadcast %cst_5 : f32 to vector<1x2048xf32>
    %45 = arith.addf %43, %44 : vector<1x2048xf32>
    %46 = arith.mulf %45, %38 : vector<1x2048xf32>
    %cst_6 = arith.constant 138.357758 : f32
    %47 = vector.broadcast %cst_6 : f32 to vector<1x2048xf32>
    %48 = arith.addf %46, %47 : vector<1x2048xf32>
    %49 = arith.mulf %48, %38 : vector<1x2048xf32>
    %cst_7 = arith.constant -30.6647987 : f32
    %50 = vector.broadcast %cst_7 : f32 to vector<1x2048xf32>
    %51 = arith.addf %49, %50 : vector<1x2048xf32>
    %52 = arith.mulf %51, %38 : vector<1x2048xf32>
    %cst_8 = arith.constant 2.50662827 : f32
    %53 = vector.broadcast %cst_8 : f32 to vector<1x2048xf32>
    %54 = arith.addf %52, %53 : vector<1x2048xf32>
    %55 = arith.mulf %54, %37 : vector<1x2048xf32>
    %cst_9 = arith.constant -54.4760971 : f32
    %56 = vector.broadcast %cst_9 : f32 to vector<1x2048xf32>
    %57 = arith.mulf %56, %38 : vector<1x2048xf32>
    %cst_10 = arith.constant 161.585831 : f32
    %58 = vector.broadcast %cst_10 : f32 to vector<1x2048xf32>
    %59 = arith.addf %57, %58 : vector<1x2048xf32>
    %60 = arith.mulf %59, %38 : vector<1x2048xf32>
    %cst_11 = arith.constant -155.698975 : f32
    %61 = vector.broadcast %cst_11 : f32 to vector<1x2048xf32>
    %62 = arith.addf %60, %61 : vector<1x2048xf32>
    %63 = arith.mulf %62, %38 : vector<1x2048xf32>
    %cst_12 = arith.constant 66.8013153 : f32
    %64 = vector.broadcast %cst_12 : f32 to vector<1x2048xf32>
    %65 = arith.addf %63, %64 : vector<1x2048xf32>
    %66 = arith.mulf %65, %38 : vector<1x2048xf32>
    %cst_13 = arith.constant -13.2806816 : f32
    %67 = vector.broadcast %cst_13 : f32 to vector<1x2048xf32>
    %68 = arith.addf %66, %67 : vector<1x2048xf32>
    %69 = arith.mulf %68, %38 : vector<1x2048xf32>
    %cst_14 = arith.constant 1.000000e+00 : f32
    %70 = vector.broadcast %cst_14 : f32 to vector<1x2048xf32>
    %71 = arith.addf %69, %70 : vector<1x2048xf32>
    %72 = arith.divf %55, %71 : vector<1x2048xf32>
    %cst_15 = arith.constant 1.000000e+00 : f32
    %73 = vector.broadcast %cst_15 : f32 to vector<1x2048xf32>
    %74 = arith.subf %73, %35 : vector<1x2048xf32>
    %75 = arith.minimumf %35, %74 : vector<1x2048xf32>
    %76 = math.log %75 : vector<1x2048xf32>
    %cst_16 = arith.constant -2.000000e+00 : f32
    %77 = vector.broadcast %cst_16 : f32 to vector<1x2048xf32>
    %78 = arith.mulf %77, %76 : vector<1x2048xf32>
    %79 = math.sqrt %78 : vector<1x2048xf32>
    %cst_17 = arith.constant -0.0077848942 : f32
    %80 = vector.broadcast %cst_17 : f32 to vector<1x2048xf32>
    %81 = arith.mulf %80, %79 : vector<1x2048xf32>
    %cst_18 = arith.constant -0.322396457 : f32
    %82 = vector.broadcast %cst_18 : f32 to vector<1x2048xf32>
    %83 = arith.addf %81, %82 : vector<1x2048xf32>
    %84 = arith.mulf %83, %79 : vector<1x2048xf32>
    %cst_19 = arith.constant -2.40075827 : f32
    %85 = vector.broadcast %cst_19 : f32 to vector<1x2048xf32>
    %86 = arith.addf %84, %85 : vector<1x2048xf32>
    %87 = arith.mulf %86, %79 : vector<1x2048xf32>
    %cst_20 = arith.constant -2.54973245 : f32
    %88 = vector.broadcast %cst_20 : f32 to vector<1x2048xf32>
    %89 = arith.addf %87, %88 : vector<1x2048xf32>
    %90 = arith.mulf %89, %79 : vector<1x2048xf32>
    %cst_21 = arith.constant 4.37466431 : f32
    %91 = vector.broadcast %cst_21 : f32 to vector<1x2048xf32>
    %92 = arith.addf %90, %91 : vector<1x2048xf32>
    %93 = arith.mulf %92, %79 : vector<1x2048xf32>
    %cst_22 = arith.constant 2.938164 : f32
    %94 = vector.broadcast %cst_22 : f32 to vector<1x2048xf32>
    %95 = arith.addf %93, %94 : vector<1x2048xf32>
    %cst_23 = arith.constant 0.00778469583 : f32
    %96 = vector.broadcast %cst_23 : f32 to vector<1x2048xf32>
    %97 = arith.mulf %96, %79 : vector<1x2048xf32>
    %cst_24 = arith.constant 0.322467119 : f32
    %98 = vector.broadcast %cst_24 : f32 to vector<1x2048xf32>
    %99 = arith.addf %97, %98 : vector<1x2048xf32>
    %100 = arith.mulf %99, %79 : vector<1x2048xf32>
    %cst_25 = arith.constant 2.44513416 : f32
    %101 = vector.broadcast %cst_25 : f32 to vector<1x2048xf32>
    %102 = arith.addf %100, %101 : vector<1x2048xf32>
    %103 = arith.mulf %102, %79 : vector<1x2048xf32>
    %cst_26 = arith.constant 3.7544086 : f32
    %104 = vector.broadcast %cst_26 : f32 to vector<1x2048xf32>
    %105 = arith.addf %103, %104 : vector<1x2048xf32>
    %106 = arith.mulf %105, %79 : vector<1x2048xf32>
    %cst_27 = arith.constant 1.000000e+00 : f32
    %107 = vector.broadcast %cst_27 : f32 to vector<1x2048xf32>
    %108 = arith.addf %106, %107 : vector<1x2048xf32>
    %109 = arith.divf %95, %108 : vector<1x2048xf32>
    %cst_28 = arith.constant 0.000000e+00 : f32
    %110 = vector.broadcast %cst_28 : f32 to vector<1x2048xf32>
    %111 = arith.cmpf olt, %37, %110 : vector<1x2048xf32>
    %cst_29 = arith.constant 0.000000e+00 : f32
    %112 = vector.broadcast %cst_29 : f32 to vector<1x2048xf32>
    %113 = arith.subf %112, %109 : vector<1x2048xf32>
    %114 = arith.select %111, %109, %113 : vector<1x2048xi1>, vector<1x2048xf32>
    %115 = math.absf %37 : vector<1x2048xf32>
    %cst_30 = arith.constant 4.757500e-01 : f32
    %116 = vector.broadcast %cst_30 : f32 to vector<1x2048xf32>
    %117 = arith.cmpf ole, %115, %116 : vector<1x2048xf32>
    %118 = arith.select %117, %72, %114 : vector<1x2048xi1>, vector<1x2048xf32>
    %cst_31 = arith.constant 5.000000e-03 : f32
    %119 = vector.broadcast %cst_31 : f32 to vector<1x2048xf32>
    %120 = arith.mulf %119, %118 : vector<1x2048xf32>
    %c0_32 = arith.constant 0 : index
    %c0_33 = arith.constant 0 : index
    %121 = vector.load %arg2[%c0_32, %c0_33] : memref<1x2048xf32, #tpu.memory_space<vmem>>, vector<1x2048xf32>
    %122 = arith.addf %121, %120 : vector<1x2048xf32>
    %c0_34 = arith.constant 0 : index
    %c0_35 = arith.constant 0 : index
    %123 = vector.load %arg3[%c0_34, %c0_35] : memref<1x2048xf32, #tpu.memory_space<vmem>>, vector<1x2048xf32>
    tpu.vector_store %arg3[%c0_34, %c0_35], %122 {strides = array<i32>} : memref<1x2048xf32, #tpu.memory_space<vmem>>, vector<1x2048xf32>,
    return
  }
  func.func @transform_0(%arg0: i32, %arg1: memref<1xi32, #tpu.memory_space<smem>>) -> (i32, i32) {
    %c0_i32 = arith.constant 0 : i32
    %c0_i32_0 = arith.constant 0 : i32
    return %arg0, %c0_i32 : i32, i32
  }
  func.func @transform_1(%arg0: i32, %arg1: memref<1xi32, #tpu.memory_space<smem>>) -> (i32, i32) {
    %c0_i32 = arith.constant 0 : i32
    %c0_i32_0 = arith.constant 0 : i32
    return %arg0, %c0_i32 : i32, i32
  }
}

</mosaic_0001>

<bundles_post_ra>
// kernel: tpu_custom_call.1
= control target key start
LH: loop header
LB: loop body
LE: loop exit
PB: predicated region body
PF: predicated region fallthrough
CT: control target
= control target key end

     0   :  { %8 = vsyncpa [#allocation5], 0  ;;  %s2831_s0 = inlined_call_operand.<no memory space> [shape: s32[1], index: 0, kind: input, shape index: {}]   ;;  %s2832_s1 = inlined_call_operand.hbm [shape: f32[1,2048], index: 1, kind: input, shape index: {}]   ;;  %s2833_s2 = inlined_call_operand.hbm [shape: f32[1,2048], index: 2, kind: output, shape index: {}]  }
   0x1   :  { %9 = vsyncpa [#allocation6], 0  ;;  %s1687_s9 = smov [#allocation4]  }
   0x2   :  { %s16_s10 = sshll.u32 %s1687_s9, 4  ;;  %s17_s10 = int_to_ptr.vmem [resolvable:$true] %s16_s10 }
   0x3   :  { %s1651_s11 = scalar_lea.vmem %s17_s10, 256  ;;  %p1656_p1 = scmp.lt.s32.totalorder %s17_s10, %s17_s10 }
   0x4   :  { %p1652_p0 = scmp.ne.s32.totalorder %s17_s10, %s1651_s11  ;;  %p1657_p2 = scmp.lt.s32.totalorder %s1651_s11, %s1651_s11 }
   0x6   :  { %p1658_p3 = por %p1657_p2, %p1656_p1 }
   0x8   :  { %p1659_p4 = pnand %p1658_p3, %p1652_p0 }
   0xa   :  { %1662 = shalt.err (!%p1659_p4)
}
   0xb   :  { %19 = dma.hbm_to_vmem [thread:$0]  %s2832_s1, 256, %s17_s10, [#allocation5]  }
   0xc   :  { %1683 = dma.done.wait [#allocation5], 256  }
   0xd   :  { %1684 = vsyncadd [#allocation5], 4294967040  ;;  %v23_v0 = vlaneseq  ;;  %v78_v11 = vstv %s2831_s0  ;;  %s1689_s0 = smov [#allocation7]  }
   0xe   :  { %s1487_s1 = sshll.u32 %s1689_s0, 4  ;;  %s1488_s1 = int_to_ptr.vmem [resolvable:$true] %s1487_s1 }
   0xf   :  { %v1708_v1 = vshrl.u32 %v23_v0, 7  ;;  %v26_v2 = vand.u32 127, %v23_v0  ;;  %s1663_s16 = scalar_lea.vmem %s1488_s1, 256  ;;  %p1668_p6 = scmp.lt.s32.totalorder %s1488_s1, %s1488_s1 }
  0x10   :  { %p1664_p5 = scmp.ne.s32.totalorder %s1488_s1, %s1663_s16  ;;  %p1669_p7 = scmp.lt.s32.totalorder %s1663_s16, %s1663_s16 }
  0x11   :  { %2879 = vst [vmem:[#allocation10_spill] sm:$0xff] %v1708_v1  ;;  %v27_v3 = vadd.s32 128, %v26_v2  ;;  %v42_v4 = vmul.u32 2048, %v1708_v1  ;;  %v28_v5 = vadd.s32 256, %v26_v2  ;;  %v29_v6 = vadd.s32 384, %v26_v2 }
  0x12   :  { %v30_v7 = vadd.s32 512, %v26_v2  ;;  %v31_v8 = vadd.s32 640, %v26_v2  ;;  %v32_v9 = vadd.s32 768, %v26_v2  ;;  %v33_v10 = vadd.s32 896, %v26_v2  ;;  %p1670_p8 = por %p1669_p7, %p1668_p6 }
  0x13   :  { %v34_v12 = vadd.s32 1024, %v26_v2  ;;  %v35_v13 = vadd.s32 1152, %v26_v2  ;;  %v43_v14 = vadd.s32 %v42_v4, %v26_v2  ;;  %v44_v15 = vadd.s32 %v42_v4, %v27_v3 }
  0x14   :  { %v36_v16 = vadd.s32 1280, %v26_v2  ;;  %v37_v17 = vadd.s32 1408, %v26_v2  ;;  %v45_v18 = vadd.s32 %v42_v4, %v28_v5  ;;  %v46_v19 = vadd.s32 %v42_v4, %v29_v6  ;;  %p1671_p9 = pnand %p1670_p8, %p1664_p5 }
  0x15   :  { %v38_v20 = vadd.s32 1536, %v26_v2  ;;  %v39_v21 = vadd.s32 1664, %v26_v2  ;;  %v47_v22 = vadd.s32 %v42_v4, %v30_v7  ;;  %v48_v23 = vadd.s32 %v42_v4, %v31_v8 }
  0x16   :  { %v40_v24 = vadd.s32 1792, %v26_v2  ;;  %v41_v25 = vadd.s32 1920, %v26_v2  ;;  %v49_v26 = vadd.s32 %v42_v4, %v32_v9  ;;  %v50_v27 = vadd.s32 %v42_v4, %v33_v10 }
  0x17   :  { %v51_v28 = vadd.s32 %v42_v4, %v34_v12  ;;  %v52_v29 = vadd.s32 %v42_v4, %v35_v13  ;;  %v79_v30 = vxor.u32 %v78_v11, %v43_v14  ;;  %v80_v31 = vxor.u32 %v78_v11, %v44_v15 }
  0x18   :  { %v53_v32 = vadd.s32 %v42_v4, %v36_v16  ;;  %v54_v33 = vadd.s32 %v42_v4, %v37_v17  ;;  %v81_v34 = vxor.u32 %v78_v11, %v45_v18  ;;  %v82_v35 = vxor.u32 %v78_v11, %v46_v19 }
  0x19   :  { %v55_v36 = vadd.s32 %v42_v4, %v38_v20  ;;  %v56_v37 = vadd.s32 %v42_v4, %v39_v21  ;;  %v83_v38 = vxor.u32 %v78_v11, %v47_v22  ;;  %v84_v39 = vxor.u32 %v78_v11, %v48_v23 }
  0x1a   :  { %v57_v40 = vadd.s32 %v42_v4, %v40_v24  ;;  %v58_v41 = vadd.s32 %v42_v4, %v41_v25  ;;  %v85_v42 = vxor.u32 %v78_v11, %v49_v26  ;;  %v86_v43 = vxor.u32 %v78_v11, %v50_v27 }
  0x1b   :  { %v87_v44 = vxor.u32 %v78_v11, %v51_v28  ;;  %v88_v45 = vxor.u32 %v78_v11, %v52_v29  ;;  %v95_v46 = vshrl.u32 %v79_v30, 17  ;;  %v96_v47 = vshrl.u32 %v80_v31, 17 }
  0x1c   :  { %v89_v48 = vxor.u32 %v78_v11, %v53_v32  ;;  %v90_v49 = vxor.u32 %v78_v11, %v54_v33  ;;  %v97_v50 = vshrl.u32 %v81_v34, 17  ;;  %v98_v51 = vshrl.u32 %v82_v35, 17 }
  0x1d   :  { %v91_v52 = vxor.u32 %v78_v11, %v55_v36  ;;  %v92_v53 = vxor.u32 %v78_v11, %v56_v37  ;;  %v99_v54 = vshrl.u32 %v83_v38, 17  ;;  %v100_v55 = vshrl.u32 %v84_v39, 17 }
  0x1e   :  { %v93_v56 = vxor.u32 %v78_v11, %v57_v40  ;;  %v94_v57 = vxor.u32 %v78_v11, %v58_v41  ;;  %v101_v58 = vshrl.u32 %v85_v42, 17  ;;  %v102_v59 = vshrl.u32 %v86_v43, 17 }
  0x1f   :  { %v103_v60 = vshrl.u32 %v87_v44, 17  ;;  %v104_v61 = vshrl.u32 %v88_v45, 17  ;;  %v111_v62 = vxor.u32 %v95_v46, %v79_v30  ;;  %v112_v63 = vxor.u32 %v96_v47, %v80_v31 }
  0x20   :  { %v105_v0 = vshrl.u32 %v89_v48, 17  ;;  %v106_v2 = vshrl.u32 %v90_v49, 17  ;;  %v113_v3 = vxor.u32 %v97_v50, %v81_v34  ;;  %v114_v4 = vxor.u32 %v98_v51, %v82_v35 }
  0x21   :  { %v107_v5 = vshrl.u32 %v91_v52, 17  ;;  %v108_v6 = vshrl.u32 %v92_v53, 17  ;;  %v115_v7 = vxor.u32 %v99_v54, %v83_v38  ;;  %v116_v8 = vxor.u32 %v100_v55, %v84_v39 }
  0x22   :  { %v109_v9 = vshrl.u32 %v93_v56, 17  ;;  %v110_v10 = vshrl.u32 %v94_v57, 17  ;;  %v117_v12 = vxor.u32 %v101_v58, %v85_v42  ;;  %v118_v13 = vxor.u32 %v102_v59, %v86_v43 }
  0x23   :  { %v119_v14 = vxor.u32 %v103_v60, %v87_v44  ;;  %v120_v11 = vxor.u32 %v104_v61, %v88_v45  ;;  %v127_v15 = vmul.u32 3982152891, %v111_v62  ;;  %v128_v16 = vmul.u32 3982152891, %v112_v63 }
  0x24   :  { %v121_v17 = vxor.u32 %v105_v0, %v89_v48  ;;  %v122_v18 = vxor.u32 %v106_v2, %v90_v49  ;;  %v129_v19 = vmul.u32 3982152891, %v113_v3  ;;  %v130_v20 = vmul.u32 3982152891, %v114_v4 }
  0x25   :  { %v123_v21 = vxor.u32 %v107_v5, %v91_v52  ;;  %v124_v22 = vxor.u32 %v108_v6, %v92_v53  ;;  %v131_v23 = vmul.u32 3982152891, %v115_v7  ;;  %v132_v24 = vmul.u32 3982152891, %v116_v8 }
  0x26   :  { %v125_v25 = vxor.u32 %v109_v9, %v93_v56  ;;  %v126_v26 = vxor.u32 %v110_v10, %v94_v57  ;;  %v133_v27 = vmul.u32 3982152891, %v117_v12  ;;  %v134_v28 = vmul.u32 3982152891, %v118_v13 }
  0x27   :  { %v135_v29 = vmul.u32 3982152891, %v119_v14  ;;  %v136_v30 = vmul.u32 3982152891, %v120_v11  ;;  %v143_v31 = vshrl.u32 %v127_v15, 11  ;;  %v144_v32 = vshrl.u32 %v128_v16, 11 }
  0x28   :  { %v137_v33 = vmul.u32 3982152891, %v121_v17  ;;  %v138_v34 = vmul.u32 3982152891, %v122_v18  ;;  %v145_v35 = vshrl.u32 %v129_v19, 11  ;;  %v146_v36 = vshrl.u32 %v130_v20, 11 }
  0x29   :  { %v139_v37 = vmul.u32 3982152891, %v123_v21  ;;  %v140_v38 = vmul.u32 3982152891, %v124_v22  ;;  %v147_v39 = vshrl.u32 %v131_v23, 11  ;;  %v148_v40 = vshrl.u32 %v132_v24, 11 }
  0x2a   :  { %v141_v41 = vmul.u32 3982152891, %v125_v25  ;;  %v142_v42 = vmul.u32 3982152891, %v126_v26  ;;  %v149_v43 = vshrl.u32 %v133_v27, 11  ;;  %v150_v44 = vshrl.u32 %v134_v28, 11 }
  0x2b   :  { %v151_v45 = vshrl.u32 %v135_v29, 11  ;;  %v152_v46 = vshrl.u32 %v136_v30, 11  ;;  %v159_v47 = vxor.u32 %v143_v31, %v127_v15  ;;  %v160_v48 = vxor.u32 %v144_v32, %v128_v16 }
  0x2c   :  { %v153_v49 = vshrl.u32 %v137_v33, 11  ;;  %v154_v50 = vshrl.u32 %v138_v34, 11  ;;  %v161_v51 = vxor.u32 %v145_v35, %v129_v19  ;;  %v162_v52 = vxor.u32 %v146_v36, %v130_v20 }
  0x2d   :  { %v155_v53 = vshrl.u32 %v139_v37, 11  ;;  %v156_v54 = vshrl.u32 %v140_v38, 11  ;;  %v163_v55 = vxor.u32 %v147_v39, %v131_v23  ;;  %v164_v56 = vxor.u32 %v148_v40, %v132_v24 }
  0x2e   :  { %v157_v57 = vshrl.u32 %v141_v41, 11  ;;  %v158_v58 = vshrl.u32 %v142_v42, 11  ;;  %v165_v59 = vxor.u32 %v149_v43, %v133_v27  ;;  %v166_v60 = vxor.u32 %v150_v44, %v134_v28 }
  0x2f   :  { %v167_v61 = vxor.u32 %v151_v45, %v135_v29  ;;  %v168_v62 = vxor.u32 %v152_v46, %v136_v30  ;;  %v175_v63 = vmul.u32 2890668881, %v159_v47  ;;  %v176_v0 = vmul.u32 2890668881, %v160_v48 }
  0x30   :  { %v169_v2 = vxor.u32 %v153_v49, %v137_v33  ;;  %v170_v3 = vxor.u32 %v154_v50, %v138_v34  ;;  %v177_v4 = vmul.u32 2890668881, %v161_v51  ;;  %v178_v5 = vmul.u32 2890668881, %v162_v52 }
  0x31   :  { %v171_v6 = vxor.u32 %v155_v53, %v139_v37  ;;  %v172_v7 = vxor.u32 %v156_v54, %v140_v38  ;;  %v179_v8 = vmul.u32 2890668881, %v163_v55  ;;  %v180_v9 = vmul.u32 2890668881, %v164_v56 }
  0x32   :  { %v173_v10 = vxor.u32 %v157_v57, %v141_v41  ;;  %v174_v12 = vxor.u32 %v158_v58, %v142_v42  ;;  %v181_v13 = vmul.u32 2890668881, %v165_v59  ;;  %v182_v14 = vmul.u32 2890668881, %v166_v60 }
  0x33   :  { %v183_v11 = vmul.u32 2890668881, %v167_v61  ;;  %v184_v15 = vmul.u32 2890668881, %v168_v62  ;;  %v191_v16 = vshrl.u32 %v175_v63, 15  ;;  %v192_v17 = vshrl.u32 %v176_v0, 15 }
  0x34   :  { %v185_v18 = vmul.u32 2890668881, %v169_v2  ;;  %v186_v19 = vmul.u32 2890668881, %v170_v3  ;;  %v193_v20 = vshrl.u32 %v177_v4, 15  ;;  %v194_v21 = vshrl.u32 %v178_v5, 15 }
  0x35   :  { %v187_v22 = vmul.u32 2890668881, %v171_v6  ;;  %v188_v23 = vmul.u32 2890668881, %v172_v7  ;;  %v195_v24 = vshrl.u32 %v179_v8, 15  ;;  %v196_v25 = vshrl.u32 %v180_v9, 15 }
  0x36   :  { %v189_v26 = vmul.u32 2890668881, %v173_v10  ;;  %v190_v27 = vmul.u32 2890668881, %v174_v12  ;;  %v197_v28 = vshrl.u32 %v181_v13, 15  ;;  %v198_v29 = vshrl.u32 %v182_v14, 15 }
  0x37   :  { %v199_v30 = vshrl.u32 %v183_v11, 15  ;;  %v200_v31 = vshrl.u32 %v184_v15, 15  ;;  %v207_v32 = vxor.u32 %v191_v16, %v175_v63  ;;  %v208_v33 = vxor.u32 %v192_v17, %v176_v0 }
  0x38   :  { %v201_v34 = vshrl.u32 %v185_v18, 15  ;;  %v202_v35 = vshrl.u32 %v186_v19, 15  ;;  %v209_v36 = vxor.u32 %v193_v20, %v177_v4  ;;  %v210_v37 = vxor.u32 %v194_v21, %v178_v5 }
  0x39   :  { %v203_v38 = vshrl.u32 %v187_v22, 15  ;;  %v204_v39 = vshrl.u32 %v188_v23, 15  ;;  %v211_v40 = vxor.u32 %v195_v24, %v179_v8  ;;  %v212_v41 = vxor.u32 %v196_v25, %v180_v9 }
  0x3a   :  { %v205_v42 = vshrl.u32 %v189_v26, 15  ;;  %v206_v43 = vshrl.u32 %v190_v27, 15  ;;  %v213_v44 = vxor.u32 %v197_v28, %v181_v13  ;;  %v214_v45 = vxor.u32 %v198_v29, %v182_v14 }
  0x3b   :  { %v215_v46 = vxor.u32 %v199_v30, %v183_v11  ;;  %v216_v47 = vxor.u32 %v200_v31, %v184_v15  ;;  %v223_v48 = vmul.u32 830770091, %v207_v32  ;;  %v224_v49 = vmul.u32 830770091, %v208_v33 }
  0x3c   :  { %v217_v50 = vxor.u32 %v201_v34, %v185_v18  ;;  %v218_v51 = vxor.u32 %v202_v35, %v186_v19  ;;  %v225_v52 = vmul.u32 830770091, %v209_v36  ;;  %v226_v53 = vmul.u32 830770091, %v210_v37 }
  0x3d   :  { %v219_v54 = vxor.u32 %v203_v38, %v187_v22  ;;  %v220_v55 = vxor.u32 %v204_v39, %v188_v23  ;;  %v227_v56 = vmul.u32 830770091, %v211_v40  ;;  %v228_v57 = vmul.u32 830770091, %v212_v41 }
  0x3e   :  { %v221_v58 = vxor.u32 %v205_v42, %v189_v26  ;;  %v222_v59 = vxor.u32 %v206_v43, %v190_v27  ;;  %v229_v60 = vmul.u32 830770091, %v213_v44  ;;  %v230_v61 = vmul.u32 830770091, %v214_v45 }
  0x3f   :  { %v231_v62 = vmul.u32 830770091, %v215_v46  ;;  %v232_v63 = vmul.u32 830770091, %v216_v47  ;;  %v239_v7 = vshrl.u32 %v223_v48, 14  ;;  %v240_v8 = vshrl.u32 %v224_v49, 14 }
  0x40   :  { %v233_v0 = vmul.u32 830770091, %v217_v50  ;;  %v234_v2 = vmul.u32 830770091, %v218_v51  ;;  %v241_v9 = vshrl.u32 %v225_v52, 14  ;;  %v242_v10 = vshrl.u32 %v226_v53, 14 }
  0x41   :  { %v235_v3 = vmul.u32 830770091, %v219_v54  ;;  %v236_v4 = vmul.u32 830770091, %v220_v55  ;;  %v243_v12 = vshrl.u32 %v227_v56, 14  ;;  %v244_v13 = vshrl.u32 %v228_v57, 14 }
  0x42   :  { %v237_v5 = vmul.u32 830770091, %v221_v58  ;;  %v238_v6 = vmul.u32 830770091, %v222_v59  ;;  %v245_v14 = vshrl.u32 %v229_v60, 14  ;;  %v246_v11 = vshrl.u32 %v230_v61, 14 }
  0x43   :  { %v247_v15 = vshrl.u32 %v231_v62, 14  ;;  %v248_v16 = vshrl.u32 %v232_v63, 14  ;;  %v249_v17 = vshrl.u32 %v233_v0, 14  ;;  %v250_v18 = vshrl.u32 %v234_v2, 14 }
  0x44   :  { %v251_v19 = vshrl.u32 %v235_v3, 14  ;;  %v252_v20 = vshrl.u32 %v236_v4, 14  ;;  %v253_v21 = vshrl.u32 %v237_v5, 14  ;;  %v254_v22 = vshrl.u32 %v238_v6, 14 }
  0x45   :  { %v255_v23 = vxor.u32 %v239_v7, %v223_v48  ;;  %v256_v24 = vxor.u32 %v240_v8, %v224_v49  ;;  %v257_v25 = vxor.u32 %v241_v9, %v225_v52  ;;  %v258_v26 = vxor.u32 %v242_v10, %v226_v53 }
  0x46   :  { %v259_v27 = vxor.u32 %v243_v12, %v227_v56  ;;  %v260_v28 = vxor.u32 %v244_v13, %v228_v57  ;;  %v261_v29 = vxor.u32 %v245_v14, %v229_v60  ;;  %v262_v30 = vxor.u32 %v246_v11, %v230_v61 }
  0x47   :  { %v263_v31 = vxor.u32 %v247_v15, %v231_v62  ;;  %v264_v32 = vxor.u32 %v248_v16, %v232_v63  ;;  %v265_v33 = vxor.u32 %v249_v17, %v233_v0  ;;  %v266_v34 = vxor.u32 %v250_v18, %v234_v2 }
  0x48   :  { %v267_v35 = vxor.u32 %v251_v19, %v235_v3  ;;  %v268_v36 = vxor.u32 %v252_v20, %v236_v4  ;;  %v269_v37 = vxor.u32 %v253_v21, %v237_v5  ;;  %v270_v38 = vxor.u32 %v254_v22, %v238_v6 }
  0x49   :  { %v271_v39 = vshrl.u32 %v255_v23, 9  ;;  %v272_v40 = vshrl.u32 %v256_v24, 9  ;;  %v273_v41 = vshrl.u32 %v257_v25, 9  ;;  %v274_v42 = vshrl.u32 %v258_v26, 9 }
  0x4a   :  { %v275_v43 = vshrl.u32 %v259_v27, 9  ;;  %v276_v44 = vshrl.u32 %v260_v28, 9  ;;  %v277_v45 = vshrl.u32 %v261_v29, 9  ;;  %v278_v46 = vshrl.u32 %v262_v30, 9 }
  0x4b   :  { %v279_v47 = vshrl.u32 %v263_v31, 9  ;;  %v280_v48 = vshrl.u32 %v264_v32, 9  ;;  %v281_v49 = vshrl.u32 %v265_v33, 9  ;;  %v282_v50 = vshrl.u32 %v266_v34, 9 }
  0x4c   :  { %v283_v51 = vshrl.u32 %v267_v35, 9  ;;  %v284_v52 = vshrl.u32 %v268_v36, 9  ;;  %v285_v53 = vshrl.u32 %v269_v37, 9  ;;  %v286_v54 = vshrl.u32 %v270_v38, 9 }
  0x4d   :  { %v287_v55 = vcvt.s32.f32 %v271_v39  ;;  %v288_v56 = vcvt.s32.f32 %v272_v40  ;;  %v289_v57 = vcvt.s32.f32 %v273_v41  ;;  %v290_v58 = vcvt.s32.f32 %v274_v42 }
  0x4e   :  { %v291_v59 = vcvt.s32.f32 %v275_v43  ;;  %v292_v60 = vcvt.s32.f32 %v276_v44  ;;  %v293_v61 = vcvt.s32.f32 %v277_v45  ;;  %v294_v62 = vcvt.s32.f32 %v278_v46 }
  0x4f   :  { %v295_v63 = vcvt.s32.f32 %v279_v47  ;;  %v296_v0 = vcvt.s32.f32 %v280_v48  ;;  %v297_v2 = vcvt.s32.f32 %v281_v49  ;;  %v298_v3 = vcvt.s32.f32 %v282_v50 }
  0x50   :  { %v299_v4 = vcvt.s32.f32 %v283_v51  ;;  %v300_v5 = vcvt.s32.f32 %v284_v52  ;;  %v301_v6 = vcvt.s32.f32 %v285_v53  ;;  %v302_v7 = vcvt.s32.f32 %v286_v54 }
  0x51   :  { %v303_v8 = vmul.f32 1.1920929e-07, %v287_v55  ;;  %v304_v9 = vmul.f32 1.1920929e-07, %v288_v56  ;;  %v305_v10 = vmul.f32 1.1920929e-07, %v289_v57  ;;  %v306_v12 = vmul.f32 1.1920929e-07, %v290_v58 }
  0x52   :  { %v307_v13 = vmul.f32 1.1920929e-07, %v291_v59  ;;  %v308_v14 = vmul.f32 1.1920929e-07, %v292_v60  ;;  %v309_v11 = vmul.f32 1.1920929e-07, %v293_v61  ;;  %v310_v15 = vmul.f32 1.1920929e-07, %v294_v62 }
  0x53   :  { %v311_v16 = vmul.f32 1.1920929e-07, %v295_v63  ;;  %v312_v17 = vmul.f32 1.1920929e-07, %v296_v0  ;;  %v313_v18 = vmul.f32 1.1920929e-07, %v297_v2  ;;  %v314_v19 = vmul.f32 1.1920929e-07, %v298_v3 }
  0x54   :  { %v315_v20 = vmul.f32 1.1920929e-07, %v299_v4  ;;  %v316_v21 = vmul.f32 1.1920929e-07, %v300_v5  ;;  %v317_v22 = vmul.f32 1.1920929e-07, %v301_v6  ;;  %v318_v23 = vmul.f32 1.1920929e-07, %v302_v7 }
  0x55   :  { %v1714_v24 = vadd.f32 5.9604645e-08, %v303_v8  ;;  %v1716_v25 = vadd.f32 5.9604645e-08, %v304_v9  ;;  %v1718_v26 = vadd.f32 5.9604645e-08, %v305_v10  ;;  %v1720_v27 = vadd.f32 5.9604645e-08, %v306_v12 }
  0x56   :  { %v1722_v28 = vadd.f32 5.9604645e-08, %v307_v13  ;;  %v1724_v29 = vadd.f32 5.9604645e-08, %v308_v14  ;;  %v1726_v30 = vadd.f32 5.9604645e-08, %v309_v11  ;;  %v1728_v31 = vadd.f32 5.9604645e-08, %v310_v15 }
  0x57   :  { %v1730_v32 = vadd.f32 5.9604645e-08, %v311_v16  ;;  %v1732_v33 = vadd.f32 5.9604645e-08, %v312_v17  ;;  %v1734_v34 = vadd.f32 5.9604645e-08, %v313_v18  ;;  %v1736_v35 = vadd.f32 5.9604645e-08, %v314_v19 }
  0x58   :  { %v1738_v36 = vadd.f32 5.9604645e-08, %v315_v20  ;;  %v1740_v37 = vadd.f32 5.9604645e-08, %v316_v21  ;;  %v1742_v38 = vadd.f32 5.9604645e-08, %v317_v22  ;;  %v1744_v39 = vadd.f32 5.9604645e-08, %v318_v23 }
  0x59   :  { %2880 = vst [vmem:[#allocation11_spill] sm:$0xff] %v1734_v34  ;;  %2881 = vst [vmem:[#allocation12_spill] sm:$0xff] %v1736_v35  ;;  %v1747_v40 = vadd.f32 -0.5, %v1714_v24  ;;  %v1750_v41 = vadd.f32 -0.5, %v1716_v25  ;;  %v1753_v42 = vadd.f32 -0.5, %v1718_v26  ;;  %v1756_v43 = vadd.f32 -0.5, %v1720_v27 }
  0x5a   :  { %2882 = vst [vmem:[#allocation13_spill] sm:$0xff] %v1738_v36  ;;  %2883 = vst [vmem:[#allocation14_spill] sm:$0xff] %v1740_v37  ;;  %v1759_v44 = vadd.f32 -0.5, %v1722_v28  ;;  %v1762_v45 = vadd.f32 -0.5, %v1724_v29  ;;  %v1765_v46 = vadd.f32 -0.5, %v1726_v30  ;;  %v1768_v47 = vadd.f32 -0.5, %v1728_v31 }
  0x5b   :  { %2884 = vst [vmem:[#allocation15_spill] sm:$0xff] %v1742_v38  ;;  %2885 = vst [vmem:[#allocation16_spill] sm:$0xff] %v1744_v39  ;;  %v1771_v48 = vadd.f32 -0.5, %v1730_v32  ;;  %v1774_v49 = vadd.f32 -0.5, %v1732_v33  ;;  %v1777_v50 = vadd.f32 -0.5, %v1734_v34  ;;  %v1780_v51 = vadd.f32 -0.5, %v1736_v35 }
  0x5c   :  { %2886 = vst [vmem:[#allocation17_spill] sm:$0xff] %v1747_v40  ;;  %2887 = vst [vmem:[#allocation18_spill] sm:$0xff] %v1750_v41  ;;  %v1783_v52 = vadd.f32 -0.5, %v1738_v36  ;;  %v1786_v53 = vadd.f32 -0.5, %v1740_v37  ;;  %v1789_v54 = vadd.f32 -0.5, %v1742_v38  ;;  %v1792_v55 = vadd.f32 -0.5, %v1744_v39 }
  0x5d   :  { %2888 = vst [vmem:[#allocation19_spill] sm:$0xff] %v1753_v42  ;;  %2889 = vst [vmem:[#allocation20_spill] sm:$0xff] %v1756_v43  ;;  %v1796_v56 = vmul.f32 %v1747_v40, %v1747_v40  ;;  %v1800_v57 = vmul.f32 %v1750_v41, %v1750_v41  ;;  %v1804_v58 = vmul.f32 %v1753_v42, %v1753_v42 }
  0x5e   :  { %2890 = vst [vmem:[#allocation21_spill] sm:$0xff] %v1759_v44  ;;  %2891 = vst [vmem:[#allocation22_spill] sm:$0xff] %v1762_v45  ;;  %v1808_v59 = vmul.f32 %v1756_v43, %v1756_v43  ;;  %v1812_v60 = vmul.f32 %v1759_v44, %v1759_v44  ;;  %v1816_v61 = vmul.f32 %v1762_v45, %v1762_v45 }
  0x5f   :  { %2892 = vst [vmem:[#allocation23_spill] sm:$0xff] %v1765_v46  ;;  %2893 = vst [vmem:[#allocation24_spill] sm:$0xff] %v1768_v47  ;;  %v1820_v62 = vmul.f32 %v1765_v46, %v1765_v46  ;;  %v1824_v63 = vmul.f32 %v1768_v47, %v1768_v47  ;;  %v1828_v0 = vmul.f32 %v1771_v48, %v1771_v48  ;;  %v367_v4 = vmul.f32 -39.69683, %v1796_v56 }
  0x60   :  { %2894 = vst [vmem:[#allocation25_spill] sm:$0xff] %v1771_v48  ;;  %2895 = vst [vmem:[#allocation26_spill] sm:$0xff] %v1774_v49  ;;  %v1832_v2 = vmul.f32 %v1774_v49, %v1774_v49  ;;  %v1836_v3 = vmul.f32 %v1777_v50, %v1777_v50  ;;  %v368_v5 = vmul.f32 -39.69683, %v1800_v57  ;;  %v1842_v6 = vmul.f32 %v1780_v51, %v1780_v51 }
  0x61   :  { %2896 = vst [vmem:[#allocation27_spill] sm:$0xff] %v1777_v50  ;;  %2897 = vst [vmem:[#allocation28_spill] sm:$0xff] %v1780_v51  ;;  %v369_v7 = vmul.f32 -39.69683, %v1804_v58  ;;  %v370_v8 = vmul.f32 -39.69683, %v1808_v59  ;;  %v1849_v10 = vmul.f32 %v1783_v52, %v1783_v52  ;;  %v1856_v11 = vmul.f32 %v1786_v53, %v1786_v53 }
  0x62   :  { %2898 = vst [vmem:[#allocation29_spill] sm:$0xff] %v1783_v52  ;;  %2899 = vst [vmem:[#allocation30_spill] sm:$0xff] %v1786_v53  ;;  %v371_v9 = vmul.f32 -39.69683, %v1812_v60  ;;  %v372_v12 = vmul.f32 -39.69683, %v1816_v61  ;;  %v1863_v18 = vmul.f32 %v1789_v54, %v1789_v54  ;;  %v1869_v22 = vmul.f32 %v1792_v55, %v1792_v55 }
  0x63   :  { %2900 = vst [vmem:[#allocation31_spill] sm:$0xff] %v1789_v54  ;;  %2901 = vst [vmem:[#allocation32_spill] sm:$0xff] %v1792_v55  ;;  %v373_v13 = vmul.f32 -39.69683, %v1820_v62  ;;  %v374_v14 = vmul.f32 -39.69683, %v1824_v63 }
  0x64   :  { %v375_v15 = vmul.f32 -39.69683, %v1828_v0  ;;  %v376_v16 = vmul.f32 -39.69683, %v1832_v2  ;;  %v377_v17 = vmul.f32 -39.69683, %v1836_v3 }
  0x65   :  { %v378_v19 = vmul.f32 -39.69683, %v1842_v6  ;;  %v379_v20 = vmul.f32 -39.69683, %v1849_v10  ;;  %v383_v21 = vadd.f32 220.9461, %v367_v4 }
  0x66   :  { %v380_v23 = vmul.f32 -39.69683, %v1856_v11  ;;  %v384_v1 = vadd.f32 220.9461, %v368_v5  ;;  %v385_v53 = vadd.f32 220.9461, %v369_v7 }
  0x67   :  { %v381_v52 = vmul.f32 -39.69683, %v1863_v18  ;;  %v386_v51 = vadd.f32 220.9461, %v370_v8  ;;  %v387_v50 = vadd.f32 220.9461, %v371_v9  ;;  %v399_v4 = vmul.f32 %v383_v21, %v1796_v56 }
  0x68   :  { %v382_v54 = vmul.f32 -39.69683, %v1869_v22  ;;  %v388_v49 = vadd.f32 220.9461, %v372_v12  ;;  %v389_v48 = vadd.f32 220.9461, %v373_v13  ;;  %v400_v43 = vmul.f32 %v384_v1, %v1800_v57 }
  0x69   :  { %v390_v47 = vadd.f32 220.9461, %v374_v14  ;;  %v391_v46 = vadd.f32 220.9461, %v375_v15  ;;  %v392_v45 = vadd.f32 220.9461, %v376_v16  ;;  %v401_v5 = vmul.f32 %v385_v53, %v1804_v58 }
  0x6a   :  { %v393_v44 = vadd.f32 220.9461, %v377_v17  ;;  %v394_v55 = vadd.f32 220.9461, %v378_v19  ;;  %v395_v7 = vadd.f32 220.9461, %v379_v20  ;;  %v402_v8 = vmul.f32 %v386_v51, %v1808_v59 }
  0x6b   :  { %v396_v42 = vadd.f32 220.9461, %v380_v23  ;;  %v403_v9 = vmul.f32 %v387_v50, %v1812_v60  ;;  %v397_v41 = vadd.f32 220.9461, %v381_v52  ;;  %v398_v12 = vadd.f32 220.9461, %v382_v54 }
  0x6c   :  { %v404_v13 = vmul.f32 %v388_v49, %v1816_v61  ;;  %v405_v14 = vmul.f32 %v389_v48, %v1820_v62  ;;  %v406_v15 = vmul.f32 %v390_v47, %v1824_v63  ;;  %v407_v16 = vmul.f32 %v391_v46, %v1828_v0 }
  0x6d   :  { %v408_v1 = vmul.f32 %v392_v45, %v1832_v2  ;;  %v415_v17 = vadd.f32 -275.9285, %v399_v4  ;;  %v409_v53 = vmul.f32 %v393_v44, %v1836_v3  ;;  %v410_v19 = vmul.f32 %v394_v55, %v1842_v6 }
  0x6e   :  { %v416_v51 = vadd.f32 -275.9285, %v400_v43  ;;  %v417_v20 = vadd.f32 -275.9285, %v401_v5  ;;  %v411_v50 = vmul.f32 %v395_v7, %v1849_v10  ;;  %v412_v52 = vmul.f32 %v396_v42, %v1856_v11 }
  0x6f   :  { %v418_v49 = vadd.f32 -275.9285, %v402_v8  ;;  %v419_v54 = vadd.f32 -275.9285, %v403_v9  ;;  %v413_v48 = vmul.f32 %v397_v41, %v1863_v18  ;;  %v414_v47 = vmul.f32 %v398_v12, %v1869_v22 }
  0x70   :  { %v420_v46 = vadd.f32 -275.9285, %v404_v13  ;;  %v421_v21 = vadd.f32 -275.9285, %v405_v14  ;;  %v422_v45 = vadd.f32 -275.9285, %v406_v15  ;;  %v431_v44 = vmul.f32 %v415_v17, %v1796_v56 }
  0x71   :  { %v423_v23 = vadd.f32 -275.9285, %v407_v16  ;;  %v424_v4 = vadd.f32 -275.9285, %v408_v1  ;;  %v425_v55 = vadd.f32 -275.9285, %v409_v53  ;;  %v432_v5 = vmul.f32 %v416_v51, %v1800_v57 }
  0x72   :  { %v426_v43 = vadd.f32 -275.9285, %v410_v19  ;;  %v433_v7 = vmul.f32 %v417_v20, %v1804_v58  ;;  %v427_v42 = vadd.f32 -275.9285, %v411_v50  ;;  %v428_v8 = vadd.f32 -275.9285, %v412_v52 }
  0x73   :  { %v434_v9 = vmul.f32 %v418_v49, %v1808_v59  ;;  %v435_v41 = vmul.f32 %v419_v54, %v1812_v60  ;;  %v429_v12 = vadd.f32 -275.9285, %v413_v48  ;;  %v430_v13 = vadd.f32 -275.9285, %v414_v47 }
  0x74   :  { %v436_v14 = vmul.f32 %v420_v46, %v1816_v61  ;;  %v437_v15 = vmul.f32 %v421_v21, %v1820_v62  ;;  %v438_v16 = vmul.f32 %v422_v45, %v1824_v63  ;;  %v439_v1 = vmul.f32 %v423_v23, %v1828_v0 }
  0x75   :  { %v440_v17 = vmul.f32 %v424_v4, %v1832_v2  ;;  %v447_v53 = vadd.f32 138.35776, %v431_v44  ;;  %v441_v19 = vmul.f32 %v425_v55, %v1836_v3  ;;  %v442_v51 = vmul.f32 %v426_v43, %v1842_v6 }
  0x76   :  { %v448_v20 = vadd.f32 138.35776, %v432_v5  ;;  %v449_v50 = vadd.f32 138.35776, %v433_v7  ;;  %v443_v52 = vmul.f32 %v427_v42, %v1849_v10  ;;  %v444_v49 = vmul.f32 %v428_v8, %v1856_v11 }
  0x77   :  { %v450_v54 = vadd.f32 138.35776, %v434_v9  ;;  %v451_v48 = vadd.f32 138.35776, %v435_v41  ;;  %v445_v47 = vmul.f32 %v429_v12, %v1863_v18  ;;  %v446_v46 = vmul.f32 %v430_v13, %v1869_v22 }
  0x78   :  { %v452_v21 = vadd.f32 138.35776, %v436_v14  ;;  %v453_v45 = vadd.f32 138.35776, %v437_v15  ;;  %v454_v23 = vadd.f32 138.35776, %v438_v16  ;;  %v463_v55 = vmul.f32 %v447_v53, %v1796_v56 }
  0x79   :  { %v455_v4 = vadd.f32 138.35776, %v439_v1  ;;  %v456_v44 = vadd.f32 138.35776, %v440_v17  ;;  %v457_v43 = vadd.f32 138.35776, %v441_v19  ;;  %v464_v7 = vmul.f32 %v448_v20, %v1800_v57 }
  0x7a   :  { %v458_v5 = vadd.f32 138.35776, %v442_v51  ;;  %v465_v42 = vmul.f32 %v449_v50, %v1804_v58  ;;  %v459_v8 = vadd.f32 138.35776, %v443_v52  ;;  %v460_v9 = vadd.f32 138.35776, %v444_v49 }
  0x7b   :  { %v466_v41 = vmul.f32 %v450_v54, %v1808_v59  ;;  %v467_v12 = vmul.f32 %v451_v48, %v1812_v60  ;;  %v461_v13 = vadd.f32 138.35776, %v445_v47  ;;  %v462_v14 = vadd.f32 138.35776, %v446_v46 }
  0x7c   :  { %v468_v15 = vmul.f32 %v452_v21, %v1816_v61  ;;  %v469_v16 = vmul.f32 %v453_v45, %v1820_v62  ;;  %v470_v1 = vmul.f32 %v454_v23, %v1824_v63  ;;  %v471_v17 = vmul.f32 %v455_v4, %v1828_v0 }
  0x7d   :  { %v472_v53 = vmul.f32 %v456_v44, %v1832_v2  ;;  %v479_v19 = vadd.f32 -30.664799, %v463_v55  ;;  %v473_v51 = vmul.f32 %v457_v43, %v1836_v3  ;;  %v480_v20 = vadd.f32 -30.664799, %v464_v7 }
  0x7e   :  { %v481_v50 = vadd.f32 -30.664799, %v465_v42  ;;  %v543_v52 = vmul.f32 -54.476097, %v1796_v56  ;;  %v474_v49 = vmul.f32 %v458_v5, %v1842_v6  ;;  %v482_v54 = vadd.f32 -30.664799, %v466_v41 }
  0x7f   :  { %v483_v48 = vadd.f32 -30.664799, %v467_v12  ;;  %v544_v47 = vmul.f32 -54.476097, %v1800_v57  ;;  %v475_v46 = vmul.f32 %v459_v8, %v1849_v10  ;;  %v484_v21 = vadd.f32 -30.664799, %v468_v15 }
  0x80   :  { %v485_v45 = vadd.f32 -30.664799, %v469_v16  ;;  %v545_v23 = vmul.f32 -54.476097, %v1804_v58  ;;  %v476_v4 = vmul.f32 %v460_v9, %v1856_v11  ;;  %v486_v44 = vadd.f32 -30.664799, %v470_v1 }
  0x81   :  { %v487_v55 = vadd.f32 -30.664799, %v471_v17  ;;  %v546_v43 = vmul.f32 -54.476097, %v1808_v59  ;;  %v477_v7 = vmul.f32 %v461_v13, %v1863_v18  ;;  %v488_v42 = vadd.f32 -30.664799, %v472_v53 }
  0x82   :  { %v547_v5 = vmul.f32 -54.476097, %v1812_v60  ;;  %v559_v41 = vadd.f32 161.58583, %v543_v52  ;;  %v478_v12 = vmul.f32 %v462_v14, %v1869_v22  ;;  %v489_v40 = vadd.f32 -30.664799, %v473_v51 }
  0x83   :  { %v548_v8 = vmul.f32 -54.476097, %v1816_v61  ;;  %v560_v15 = vadd.f32 161.58583, %v544_v47  ;;  %v490_v16 = vadd.f32 -30.664799, %v474_v49  ;;  %v1929_v39 = vmul.f32 %v479_v19, %v1796_v56 }
  0x84   :  { %v549_v9 = vmul.f32 -54.476097, %v1820_v62  ;;  %v561_v1 = vadd.f32 161.58583, %v545_v23  ;;  %v491_v17 = vadd.f32 -30.664799, %v475_v46  ;;  %v1933_v13 = vmul.f32 %v480_v20, %v1800_v57 }
  0x85   :  { %v550_v53 = vmul.f32 -54.476097, %v1824_v63  ;;  %v562_v52 = vadd.f32 161.58583, %v546_v43  ;;  %v492_v38 = vadd.f32 -30.664799, %v476_v4  ;;  %v575_v47 = vmul.f32 %v559_v41, %v1796_v56 }
  0x86   :  { %v551_v14 = vmul.f32 -54.476097, %v1828_v0  ;;  %v563_v51 = vadd.f32 161.58583, %v547_v5  ;;  %v1939_v49 = vmul.f32 %v481_v50, %v1804_v58  ;;  %v552_v19 = vmul.f32 -54.476097, %v1832_v2 }
  0x87   :  { %v564_v37 = vadd.f32 161.58583, %v548_v8  ;;  %v576_v46 = vmul.f32 %v560_v15, %v1800_v57  ;;  %v493_v23 = vadd.f32 -30.664799, %v477_v7  ;;  %v494_v20 = vadd.f32 -30.664799, %v478_v12 }
  0x88   :  { %v565_v36 = vadd.f32 161.58583, %v549_v9  ;;  %v577_v35 = vmul.f32 %v561_v1, %v1804_v58  ;;  %v1945_v4 = vmul.f32 %v482_v54, %v1808_v59  ;;  %v1948_v43 = vmul.f32 %v483_v48, %v1812_v60 }
  0x89   :  { %v566_v5 = vadd.f32 161.58583, %v550_v53  ;;  %v578_v50 = vmul.f32 %v562_v52, %v1808_v59  ;;  %v553_v41 = vmul.f32 -54.476097, %v1836_v3  ;;  %v567_v34 = vadd.f32 161.58583, %v551_v14 }
  0x8a   :  { %v579_v8 = vmul.f32 %v563_v51, %v1812_v60  ;;  %v591_v15 = vadd.f32 -155.69897, %v575_v47  ;;  %v1954_v7 = vmul.f32 %v484_v21, %v1816_v61  ;;  %v568_v12 = vadd.f32 161.58583, %v552_v19 }
  0x8b   :  { %v580_v9 = vmul.f32 %v564_v37, %v1816_v61  ;;  %v592_v54 = vadd.f32 -155.69897, %v576_v46  ;;  %v1958_v1 = vmul.f32 %v485_v45, %v1820_v62  ;;  %v1961_v48 = vmul.f32 %v486_v44, %v1824_v63 }
  0x8c   :  { %v581_v53 = vmul.f32 %v565_v36, %v1820_v62  ;;  %v593_v52 = vadd.f32 -155.69897, %v577_v35  ;;  %v1965_v14 = vmul.f32 %v487_v55, %v1828_v0  ;;  %v554_v51 = vmul.f32 -54.476097, %v1842_v6 }
  0x8d   :  { %v582_v21 = vmul.f32 %v566_v5, %v1824_v63  ;;  %v594_v47 = vadd.f32 -155.69897, %v578_v50  ;;  %v569_v19 = vadd.f32 161.58583, %v553_v41  ;;  %v583_v37 = vmul.f32 %v567_v34, %v1828_v0 }
  0x8e   :  { %2902 = vst [vmem:[#allocation33_spill] sm:$0xff] %v1965_v14  ;;  %v595_v46 = vadd.f32 -155.69897, %v579_v8  ;;  %v607_v45 = vmul.f32 %v591_v15, %v1796_v56  ;;  %v1972_v44 = vmul.f32 %v488_v42, %v1832_v2  ;;  %v584_v36 = vmul.f32 %v568_v12, %v1832_v2 }
  0x8f   :  { %v596_v35 = vadd.f32 -155.69897, %v580_v9  ;;  %v608_v55 = vmul.f32 %v592_v54, %v1800_v57  ;;  %v1977_v14 = vmul.f32 %v489_v40, %v1836_v3  ;;  %v555_v5 = vmul.f32 -54.476097, %v1849_v10 }
  0x90   :  { %2903 = vst [vmem:[#allocation34_spill] sm:$0xff] %v1972_v44  ;;  %v597_v50 = vadd.f32 -155.69897, %v581_v53  ;;  %v609_v41 = vmul.f32 %v593_v52, %v1804_v58  ;;  %v1982_v34 = vmul.f32 %v490_v16, %v1842_v6  ;;  %v570_v8 = vadd.f32 161.58583, %v554_v51 }
  0x91   :  { %2904 = vst [vmem:[#allocation35_spill] sm:$0xff] %v1977_v14  ;;  %v598_v15 = vadd.f32 -155.69897, %v582_v21  ;;  %v610_v42 = vmul.f32 %v594_v47, %v1808_v59  ;;  %v585_v12 = vmul.f32 %v569_v19, %v1836_v3  ;;  %v599_v9 = vadd.f32 -155.69897, %v583_v37 }
  0x92   :  { %2905 = vst [vmem:[#allocation36_spill] sm:$0xff] %v1982_v34  ;;  %v611_v54 = vmul.f32 %v595_v46, %v1812_v60  ;;  %v623_v44 = vadd.f32 66.801315, %v607_v45  ;;  %v1988_v40 = vmul.f32 %v491_v17, %v1849_v10  ;;  %v600_v14 = vadd.f32 -155.69897, %v584_v36 }
  0x93   :  { %v612_v53 = vmul.f32 %v596_v35, %v1816_v61  ;;  %v624_v52 = vadd.f32 66.801315, %v608_v55  ;;  %v1992_v16 = vmul.f32 %v492_v38, %v1856_v11  ;;  %v571_v51 = vadd.f32 161.58583, %v555_v5 }
  0x94   :  { %2906 = vst [vmem:[#allocation37_spill] sm:$0xff] %v1988_v40  ;;  %v613_v21 = vmul.f32 %v597_v50, %v1820_v62  ;;  %v625_v47 = vadd.f32 66.801315, %v609_v41  ;;  %v1996_v19 = vmul.f32 %v493_v23, %v1863_v18  ;;  %v586_v37 = vmul.f32 %v570_v8, %v1842_v6 }
  0x95   :  { %2907 = vst [vmem:[#allocation38_spill] sm:$0xff] %v1992_v16  ;;  %v614_v46 = vmul.f32 %v598_v15, %v1824_v63  ;;  %v626_v17 = vadd.f32 66.801315, %v610_v42  ;;  %v601_v45 = vadd.f32 -155.69897, %v585_v12  ;;  %v615_v36 = vmul.f32 %v599_v9, %v1828_v0 }
  0x96   :  { %2908 = vst [vmem:[#allocation39_spill] sm:$0xff] %v1996_v19  ;;  %v627_v35 = vadd.f32 66.801315, %v611_v54  ;;  %v639_v55 = vmul.f32 %v623_v44, %v1796_v56  ;;  %v2003_v38 = vmul.f32 %v494_v20, %v1869_v22  ;;  %v616_v5 = vmul.f32 %v600_v14, %v1832_v2 }
  0x97   :  { %v628_v50 = vadd.f32 66.801315, %v612_v53  ;;  %v640_v23 = vmul.f32 %v624_v52, %v1800_v57  ;;  %v2008_v41 = vadd.f32 2.5066283, %v1929_v39  ;;  %v587_v8 = vmul.f32 %v571_v51, %v1849_v10 }
  0x98   :  { %2909 = vst [vmem:[#allocation40_spill] sm:$0xff] %v2003_v38  ;;  %v629_v15 = vadd.f32 66.801315, %v613_v21  ;;  %v641_v42 = vmul.f32 %v625_v47, %v1804_v58  ;;  %v556_v12 = vmul.f32 -54.476097, %v1856_v11  ;;  %v642_v20 = vmul.f32 %v626_v17, %v1808_v59 }
  0x99   :  { %v602_v9 = vadd.f32 -155.69897, %v586_v37  ;;  %v630_v44 = vadd.f32 66.801315, %v614_v46  ;;  %v617_v54 = vmul.f32 %v601_v45, %v1836_v3  ;;  %v631_v14 = vadd.f32 66.801315, %v615_v36 }
  0x9a   :  { %v643_v53 = vmul.f32 %v627_v35, %v1812_v60  ;;  %v655_v52 = vadd.f32 -13.280682, %v639_v55  ;;  %v557_v39 = vmul.f32 -54.476097, %v1863_v18  ;;  %v632_v38 = vadd.f32 66.801315, %v616_v5 }
  0x9b   :  { %v644_v51 = vmul.f32 %v628_v50, %v1816_v61  ;;  %v656_v21 = vadd.f32 -13.280682, %v640_v23  ;;  %v558_v47 = vmul.f32 -54.476097, %v1869_v22  ;;  %v603_v19 = vadd.f32 -155.69897, %v587_v8 }
  0x9c   :  { %v645_v37 = vmul.f32 %v629_v15, %v1820_v62  ;;  %v657_v46 = vadd.f32 -13.280682, %v641_v42  ;;  %v572_v16 = vadd.f32 161.58583, %v556_v12  ;;  %v618_v17 = vmul.f32 %v602_v9, %v1842_v6 }
  0x9d   :  { %v646_v45 = vmul.f32 %v630_v44, %v1824_v63  ;;  %v658_v36 = vadd.f32 -13.280682, %v642_v20  ;;  %v633_v35 = vadd.f32 66.801315, %v617_v54  ;;  %v647_v55 = vmul.f32 %v631_v14, %v1828_v0 }
  0x9e   :  { %v659_v40 = vadd.f32 -13.280682, %v643_v53  ;;  %v671_v5 = vmul.f32 %v655_v52, %v1796_v56  ;;  %v573_v50 = vadd.f32 161.58583, %v557_v39  ;;  %v648_v23 = vmul.f32 %v632_v38, %v1832_v2 }
  0x9f   :  { %v660_v34 = vadd.f32 -13.280682, %v644_v51  ;;  %v672_v8 = vmul.f32 %v656_v21, %v1800_v57  ;;  %v574_v15 = vadd.f32 161.58583, %v558_v47  ;;  %v619_v42 = vmul.f32 %v603_v19, %v1849_v10 }
  0xa0   :  { %v661_v12 = vadd.f32 -13.280682, %v645_v37  ;;  %v673_v9 = vmul.f32 %v657_v46, %v1804_v58  ;;  %v588_v44 = vmul.f32 %v572_v16, %v1856_v11  ;;  %v634_v20 = vadd.f32 66.801315, %v618_v17 }
  0xa1   :  { %v662_v54 = vadd.f32 -13.280682, %v646_v45  ;;  %v674_v14 = vmul.f32 %v658_v36, %v1808_v59  ;;  %v649_v56 = vmul.f32 %v633_v35, %v1836_v3  ;;  %v663_v53 = vadd.f32 -13.280682, %v647_v55 }
  0xa2   :  { %v675_v38 = vmul.f32 %v659_v40, %v1812_v60  ;;  %v687_v52 = vadd.f32 1.0, %v671_v5  ;;  %v589_v57 = vmul.f32 %v573_v50, %v1863_v18  ;;  %v664_v39 = vadd.f32 -13.280682, %v648_v23 }
  0xa3   :  { %v676_v19 = vmul.f32 %v660_v34, %v1816_v61  ;;  %v688_v51 = vadd.f32 1.0, %v672_v8  ;;  %v590_v58 = vmul.f32 %v574_v15, %v1869_v22  ;;  %v635_v21 = vadd.f32 66.801315, %v619_v42 }
  0xa4   :  { %v677_v16 = vmul.f32 %v661_v12, %v1820_v62  ;;  %v689_v47 = vadd.f32 1.0, %v673_v9  ;;  %v604_v37 = vadd.f32 -155.69897, %v588_v44  ;;  %v650_v59 = vmul.f32 %v634_v20, %v1842_v6 }
  0xa5   :  { %v678_v46 = vmul.f32 %v662_v54, %v1824_v63  ;;  %v690_v17 = vadd.f32 1.0, %v674_v14  ;;  %v665_v60 = vadd.f32 -13.280682, %v649_v56  ;;  %v679_v40 = vmul.f32 %v663_v53, %v1828_v0 }
  0xa6   :  { %v691_v45 = vadd.f32 1.0, %v675_v38  ;;  %1515 = vrcp.f32 %v687_v52  ;;  %v605_v36 = vadd.f32 -155.69897, %v589_v57  ;;  %v680_v61 = vmul.f32 %v664_v39, %v1832_v2 }
  0xa7   :  { %v692_v34 = vadd.f32 1.0, %v676_v19  ;;  %1517 = vrcp.f32 %v688_v51  ;;  %v651_v35 = vmul.f32 %v635_v21, %v1849_v10  ;;  %v693_v62 = vadd.f32 1.0, %v677_v16 }
  0xa8   :  { %1519 = vrcp.f32 %v689_v47  ;;  %v735_v55 = vsub.f32 1.0, %v1714_v24  ;;  %v620_v5 = vmul.f32 %v604_v37, %v1856_v11  ;;  %v694_v63 = vadd.f32 1.0, %v678_v46 }
  0xa9   :  { %1521 = vrcp.f32 %v690_v17  ;;  %v736_v50 = vsub.f32 1.0, %v1716_v25  ;;  %v666_v0 = vadd.f32 -13.280682, %v650_v59  ;;  %v681_v23 = vmul.f32 %v665_v60, %v1836_v3  ;;  %v2910_v17 = vld [vmem:[#allocation11_spill] sm:$0xff] }
  0xaa   :  { %v695_v8 = vadd.f32 1.0, %v679_v40  ;;  %1523 = vrcp.f32 %v691_v45  ;;  %v621_v2 = vmul.f32 %v605_v36, %v1863_v18  ;;  %v696_v15 = vadd.f32 1.0, %v680_v61  ;;  %v2911_v36 = vld [vmem:[#allocation12_spill] sm:$0xff] }
  0xab   :  { %1525 = vrcp.f32 %v692_v34  ;;  %v737_v42 = vsub.f32 1.0, %v1718_v26  ;;  %v667_v12 = vadd.f32 -13.280682, %v651_v35  ;;  %v738_v9 = vsub.f32 1.0, %v1720_v27 }
  0xac   :  { %1527 = vrcp.f32 %v693_v62  ;;  %v751_v44 = vmin.f32 %v1714_v24, %v735_v55  ;;  %v2050_v20 = vadd.f32 2.5066283, %v1933_v13  ;;  %v739_v3 = vsub.f32 1.0, %v1722_v28  ;;  %v2912_v55 = vld [vmem:[#allocation13_spill] sm:$0xff] }
  0xad   :  { %1529 = vrcp.f32 %v694_v63  ;;  %v752_v54 = vmin.f32 %v1716_v25, %v736_v50  ;;  %v606_v14 = vadd.f32 -155.69897, %v590_v58  ;;  %v682_v56 = vmul.f32 %v666_v0, %v1842_v6  ;;  %v2913_v50 = vld [vmem:[#allocation14_spill] sm:$0xff] }
  0xae   :  { %v697_v53 = vadd.f32 1.0, %v681_v23  ;;  %1531 = vrcp.f32 %v695_v8  ;;  %v636_v38 = vadd.f32 66.801315, %v620_v5  ;;  %v740_v52 = vsub.f32 1.0, %v1724_v29 }
  0xaf   :  { %1533 = vrcp.f32 %v696_v15  ;;  %v753_v57 = vmin.f32 %v1718_v26, %v737_v42  ;;  %v637_v24 = vadd.f32 66.801315, %v621_v2  ;;  %v683_v13 = vmul.f32 %v667_v12, %v1849_v10  ;;  %v2914_v2 = vld [vmem:[#allocation15_spill] sm:$0xff] }
  0xb0   :  { %v754_v39 = vmin.f32 %v1720_v27, %v738_v9  ;;  %1535 = vlog2.f32 %v751_v44  ;;  %v2060_v19 = vadd.f32 2.5066283, %v1939_v49  ;;  %v741_v25 = vsub.f32 1.0, %v1726_v30  ;;  %v2915_v9 = vld [vmem:[#allocation16_spill] sm:$0xff] }
  0xb1   :  { %v755_v6 = vmin.f32 %v1722_v28, %v739_v3  ;;  %1537 = vlog2.f32 %v752_v54  ;;  %v622_v51 = vmul.f32 %v606_v14, %v1869_v22  ;;  %v698_v58 = vadd.f32 1.0, %v682_v56 }
  0xb2   :  { %1539 = vrcp.f32 %v697_v53  ;;  %v742_v26 = vsub.f32 1.0, %v1728_v31  ;;  %v652_v10 = vmul.f32 %v636_v38, %v1856_v11  ;;  %v743_v27 = vsub.f32 1.0, %v1730_v32 }
  0xb3   :  { %v2066_v21 = vpop.eup %1515  ;;  %v756_v49 = vmin.f32 %v1724_v29, %v740_v52  ;;  %1541 = vlog2.f32 %v753_v57  ;;  %v653_v28 = vmul.f32 %v637_v24, %v1863_v18  ;;  %v699_v47 = vadd.f32 1.0, %v683_v13  ;;  %v2916_v13 = vld [vmem:[#allocation17_spill] sm:$0xff] }
  0xb4   :  { %v2071_v16 = vpop.eup %1517  ;;  %v744_v37 = vsub.f32 1.0, %v1732_v33  ;;  %1543 = vlog2.f32 %v754_v39  ;;  %v2078_v46 = vadd.f32 2.5066283, %v1945_v4  ;;  %v745_v60 = vsub.f32 1.0, %v2910_v17 }
  0xb5   :  { %v2075_v59 = vpop.eup %1519  ;;  %v757_v40 = vmin.f32 %v1726_v30, %v741_v25  ;;  %1545 = vlog2.f32 %v755_v6  ;;  %v638_v45 = vadd.f32 66.801315, %v622_v51  ;;  %v746_v61 = vsub.f32 1.0, %v2911_v36  ;;  %v2917_v25 = vld [vmem:[#allocation33_spill] sm:$0xff] }
  0xb6   :  { %v2082_v29 = vpop.eup %1521  ;;  %1547 = vrcp.f32 %v698_v58  ;;  %v758_v34 = vmin.f32 %v1728_v31, %v742_v26  ;;  %v668_v62 = vadd.f32 -13.280682, %v652_v10  ;;  %v747_v5 = vsub.f32 1.0, %v2912_v55  ;;  %v2918_v58 = vld [vmem:[#allocation34_spill] sm:$0xff] }
  0xb7   :  { %v2086_v35 = vpop.eup %1523  ;;  %v759_v4 = vmin.f32 %v1730_v32, %v743_v27  ;;  %1549 = vlog2.f32 %v756_v49  ;;  %v669_v30 = vadd.f32 -13.280682, %v653_v28  ;;  %v748_v0 = vsub.f32 1.0, %v2913_v50  ;;  %v2920_v49 = vld [vmem:[#allocation35_spill] sm:$0xff] }
  0xb8   :  { %v2090_v63 = vpop.eup %1525  ;;  %1551 = vrcp.f32 %v699_v47  ;;  %v760_v23 = vmin.f32 %v1732_v33, %v744_v37  ;;  %v515_v31 = vadd.f32 2.5066283, %v1948_v43  ;;  %v749_v15 = vsub.f32 1.0, %v2914_v2 }
  0xb9   :  { %v2094_v8 = vpop.eup %1527  ;;  %v761_v42 = vmin.f32 %v2910_v17, %v745_v60  ;;  %1553 = vlog2.f32 %v757_v40  ;;  %v654_v32 = vmul.f32 %v638_v45, %v1869_v22  ;;  %v750_v44 = vsub.f32 1.0, %v2915_v9  ;;  %v2921_v60 = vld [vmem:[#allocation36_spill] sm:$0xff]  ;;  %v2922_v45 = vld [vmem:[#allocation37_spill] sm:$0xff] }
  0xba   :  { %v2099_v12 = vpop.eup %1529  ;;  %v762_v3 = vmin.f32 %v2911_v36, %v746_v61  ;;  %1555 = vlog2.f32 %v758_v34  ;;  %v516_v33 = vadd.f32 2.5066283, %v1954_v7  ;;  %v684_v43 = vmul.f32 %v668_v62, %v1856_v11  ;;  %v2923_v62 = vld [vmem:[#allocation38_spill] sm:$0xff] }
  0xbb   :  { %v2104_v54 = vpop.eup %1531  ;;  %v763_v14 = vmin.f32 %v2912_v55, %v747_v5  ;;  %1557 = vlog2.f32 %v759_v4  ;;  %v517_v53 = vadd.f32 2.5066283, %v1958_v1  ;;  %v685_v38 = vmul.f32 %v669_v30, %v1863_v18 }
  0xbc   :  { %v2109_v56 = vpop.eup %1533  ;;  %v764_v52 = vmin.f32 %v2913_v50, %v748_v0  ;;  %1559 = vlog2.f32 %v760_v23  ;;  %v518_v24 = vadd.f32 2.5066283, %v1961_v48  ;;  %v2117_v7 = vmul.f32 %v2916_v13, %v2008_v41  ;;  %v2919_v48 = vld [vmem:[#allocation18_spill] sm:$0xff]  ;;  %v2925_v50 = vld [vmem:[#allocation39_spill] sm:$0xff]  ;;  %v2926_v23 = vld [vmem:[#allocation40_spill] sm:$0xff] }
  0xbd   :  { %v1536_v57 = vpop.eup %1535  ;;  %v765_v11 = vmin.f32 %v2914_v2, %v749_v15  ;;  %1561 = vlog2.f32 %v761_v42  ;;  %v519_v6 = vadd.f32 2.5066283, %v2917_v25  ;;  %v670_v51 = vadd.f32 -13.280682, %v654_v32  ;;  %v2927_v32 = vld [vmem:[#allocation20_spill] sm:$0xff] }
  0xbe   :  { %v1538_v39 = vpop.eup %1537  ;;  %v766_v1 = vmin.f32 %v2915_v9, %v750_v44  ;;  %1563 = vlog2.f32 %v762_v3  ;;  %v520_v26 = vadd.f32 2.5066283, %v2918_v58  ;;  %v2127_v10 = vmul.f32 %v2919_v48, %v2050_v20  ;;  %v2924_v20 = vld [vmem:[#allocation19_spill] sm:$0xff]  ;;  %v2932_v58 = vld [vmem:[#allocation25_spill] sm:$0xff] }
  0xbf   :  { %v2122_v18 = vpop.eup %1539  ;;  %v700_v41 = vadd.f32 1.0, %v684_v43  ;;  %1565 = vlog2.f32 %v763_v14  ;;  %v521_v28 = vadd.f32 2.5066283, %v2920_v49  ;;  %v701_v47 = vadd.f32 1.0, %v685_v38  ;;  %v2929_v14 = vld [vmem:[#allocation22_spill] sm:$0xff] }
  0xc0   :  { %v1542_v27 = vpop.eup %1541  ;;  %v768_v37 = vmul.f32 0.6931472, %v1536_v57  ;;  %1567 = vlog2.f32 %v764_v52  ;;  %v522_v40 = vadd.f32 2.5066283, %v2921_v60  ;;  %v523_v36 = vadd.f32 2.5066283, %v2922_v45 }
  0xc1   :  { %v1544_v17 = vpop.eup %1543  ;;  %v770_v61 = vmul.f32 0.6931472, %v1538_v39  ;;  %1569 = vlog2.f32 %v765_v11  ;;  %v524_v55 = vadd.f32 2.5066283, %v2923_v62  ;;  %v529_v5 = vmul.f32 %v2924_v20, %v2060_v19  ;;  %v2930_v39 = vld [vmem:[#allocation23_spill] sm:$0xff]  ;;  %v2933_v49 = vld [vmem:[#allocation26_spill] sm:$0xff] }
  0xc2   :  { %v1546_v34 = vpop.eup %1545  ;;  %v686_v4 = vmul.f32 %v670_v51, %v1869_v22  ;;  %1571 = vlog2.f32 %v766_v1  ;;  %v525_v0 = vadd.f32 2.5066283, %v2925_v50  ;;  %v526_v2 = vadd.f32 2.5066283, %v2926_v23  ;;  %v2928_v22 = vld [vmem:[#allocation21_spill] sm:$0xff]  ;;  %v2931_v51 = vld [vmem:[#allocation24_spill] sm:$0xff] }
  0xc3   :  { %v2136_v30 = vpop.eup %1547  ;;  %1573 = vrcp.f32 %v700_v41  ;;  %v772_v15 = vmul.f32 0.6931472, %v1542_v27  ;;  %v530_v9 = vmul.f32 %v2927_v32, %v2078_v46  ;;  %v774_v44 = vmul.f32 0.6931472, %v1544_v17  ;;  %v2935_v45 = vld [vmem:[#allocation28_spill] sm:$0xff] }
  0xc4   :  { %v1550_v42 = vpop.eup %1549  ;;  %1575 = vrcp.f32 %v701_v47  ;;  %v2142_v3 = vmul.f32 -2.0, %v768_v37  ;;  %v531_v43 = vmul.f32 %v2928_v22, %v515_v31  ;;  %v532_v38 = vmul.f32 %v2929_v14, %v516_v33  ;;  %v2934_v37 = vld [vmem:[#allocation27_spill] sm:$0xff] }
  0xc5   :  { %v2144_v19 = vpop.eup %1551  ;;  %v776_v52 = vmul.f32 0.6931472, %v1546_v34  ;;  %v2148_v57 = vmul.f32 -2.0, %v770_v61  ;;  %v533_v25 = vmul.f32 %v2930_v39, %v517_v53  ;;  %v534_v1 = vmul.f32 %v2931_v51, %v518_v24  ;;  %v2936_v34 = vld [vmem:[#allocation29_spill] sm:$0xff]  ;;  %v2937_v24 = vld [vmem:[#allocation30_spill] sm:$0xff] }
  0xc6   :  { %v1554_v11 = vpop.eup %1553  ;;  %v535_v46 = vmul.f32 %v2932_v58, %v519_v6  ;;  %v702_v41 = vadd.f32 1.0, %v686_v4  ;;  %v536_v47 = vmul.f32 %v2933_v49, %v520_v26  ;;  %v537_v17 = vmul.f32 %v2934_v37, %v521_v28  ;;  %v2938_v28 = vld [vmem:[#allocation31_spill] sm:$0xff] }
  0xc7   :  { %v1556_v27 = vpop.eup %1555  ;;  %v778_v60 = vmul.f32 0.6931472, %v1550_v42  ;;  %v2155_v31 = vmul.f32 -2.0, %v772_v15  ;;  %v538_v61 = vmul.f32 %v2935_v45, %v522_v40  ;;  %v539_v62 = vmul.f32 %v2936_v34, %v523_v36  ;;  %v2939_v42 = vld [vmem:[#allocation32_spill] sm:$0xff] }
  0xc8   :  { %v1558_v33 = vpop.eup %1557  ;;  %v2159_v50 = vmul.f32 -2.0, %v774_v44  ;;  %1577 = vrsqrt.f32 %v2142_v3  ;;  %v540_v6 = vmul.f32 %v2937_v24, %v524_v55  ;;  %v780_v4 = vmul.f32 0.6931472, %v1554_v11 }
  0xc9   :  { %v1560_v53 = vpop.eup %1559  ;;  %v2163_v23 = vmul.f32 -2.0, %v776_v52  ;;  %1579 = vrsqrt.f32 %v2148_v57  ;;  %v541_v15 = vmul.f32 %v2938_v28, %v525_v0  ;;  %v2168_v37 = vmul.f32 %v2939_v42, %v526_v2 }
  0xca   :  { %v1562_v26 = vpop.eup %1561  ;;  %1581 = vrcp.f32 %v702_v41  ;;  %v782_v40 = vmul.f32 0.6931472, %v1556_v27  ;;  %v2172_v44 = vmul.f32 %v2066_v21, %v2117_v7  ;;  %v784_v34 = vmul.f32 0.6931472, %v1558_v33 }
  0xcb   :  { %v1564_v36 = vpop.eup %1563  ;;  %v2174_v55 = vmul.f32 -2.0, %v778_v60  ;;  %1583 = vrsqrt.f32 %v2155_v31  ;;  %v2179_v11 = vmul.f32 %v2071_v16, %v2127_v10  ;;  %v2182_v0 = vmul.f32 %v2075_v59, %v529_v5 }
  0xcc   :  { %2940 = vst [vmem:[#allocation11_spill] sm:$0xff] %v2172_v44  ;;  %v1566_v52 = vpop.eup %1565  ;;  %v786_v2 = vmul.f32 0.6931472, %v1560_v53  ;;  %1585 = vrsqrt.f32 %v2159_v50  ;;  %v2186_v21 = vmul.f32 %v2082_v29, %v530_v9  ;;  %v788_v7 = vmul.f32 0.6931472, %v1562_v26 }
  0xcd   :  { %2941 = vst [vmem:[#allocation12_spill] sm:$0xff] %v2179_v11  ;;  %2942 = vst [vmem:[#allocation13_spill] sm:$0xff] %v2182_v0  ;;  %v1568_v41 = vpop.eup %1567  ;;  %v2188_v27 = vmul.f32 -2.0, %v780_v4  ;;  %1587 = vrsqrt.f32 %v2163_v23  ;;  %v2192_v33 = vmul.f32 %v2086_v35, %v531_v43  ;;  %v2195_v16 = vmul.f32 %v2090_v63, %v532_v38 }
  0xce   :  { %2943 = vst [vmem:[#allocation14_spill] sm:$0xff] %v2186_v21  ;;  %v1570_v60 = vpop.eup %1569  ;;  %v790_v59 = vmul.f32 0.6931472, %v1564_v36  ;;  %v2197_v10 = vmul.f32 -2.0, %v782_v40  ;;  %v2200_v53 = vmul.f32 %v2094_v8, %v533_v25  ;;  %v792_v29 = vmul.f32 0.6931472, %v1566_v52 }
  0xcf   :  { %2944 = vst [vmem:[#allocation15_spill] sm:$0xff] %v2192_v33  ;;  %2945 = vst [vmem:[#allocation16_spill] sm:$0xff] %v2195_v16  ;;  %v1572_v5 = vpop.eup %1571  ;;  %v2202_v9 = vmul.f32 -2.0, %v784_v34  ;;  %1589 = vrsqrt.f32 %v2174_v55  ;;  %v2206_v26 = vmul.f32 %v2099_v12, %v534_v1  ;;  %v2209_v35 = vmul.f32 %v2104_v54, %v535_v46 }
  0xd0   :  { %2946 = vst [vmem:[#allocation17_spill] sm:$0xff] %v2200_v53  ;;  %v1574_v4 = vpop.eup %1573  ;;  %v794_v63 = vmul.f32 0.6931472, %v1568_v41  ;;  %v2211_v43 = vmul.f32 -2.0, %v786_v2  ;;  %v2214_v40 = vmul.f32 %v2109_v56, %v536_v47  ;;  %v796_v8 = vmul.f32 0.6931472, %v1570_v60 }
  0xd1   :  { %2947 = vst [vmem:[#allocation33_spill] sm:$0xff] %v2206_v26  ;;  %2948 = vst [vmem:[#allocation34_spill] sm:$0xff] %v2209_v35  ;;  %v1576_v38 = vpop.eup %1575  ;;  %v2216_v25 = vmul.f32 -2.0, %v788_v7  ;;  %1591 = vrsqrt.f32 %v2188_v27  ;;  %v2220_v34 = vmul.f32 %v2122_v18, %v537_v17  ;;  %v798_v12 = vmul.f32 0.6931472, %v1572_v5 }
  0xd2   :  { %2949 = vst [vmem:[#allocation18_spill] sm:$0xff] %v2214_v40  ;;  %v2222_v1 = vmul.f32 -2.0, %v790_v59  ;;  %1593 = vrsqrt.f32 %v2197_v10  ;;  %v2226_v54 = vmul.f32 %v2136_v30, %v538_v61  ;;  %v2229_v46 = vmul.f32 %v2144_v19, %v539_v62 }
  0xd3   :  { %2950 = vst [vmem:[#allocation35_spill] sm:$0xff] %v2220_v34  ;;  %v2231_v56 = vmul.f32 -2.0, %v792_v29  ;;  %1595 = vrsqrt.f32 %v2202_v9  ;;  %v2234_v47 = vmul.f32 %v1574_v4, %v540_v6  ;;  %v2236_v36 = vmul.f32 %v1576_v38, %v541_v15 }
  0xd4   :  { %2951 = vst [vmem:[#allocation36_spill] sm:$0xff] %v2226_v54  ;;  %2952 = vst [vmem:[#allocation37_spill] sm:$0xff] %v2229_v46  ;;  %v2238_v18 = vmul.f32 -2.0, %v794_v63  ;;  %1597 = vrsqrt.f32 %v2211_v43  ;;  %v2241_v52 = vmul.f32 -2.0, %v796_v8  ;;  %vm817_vm0 = vcmp.eq.f32.partialorder %v2142_v3, inf }
  0xd5   :  { %2953 = vst [vmem:[#allocation38_spill] sm:$0xff] %v2234_v47  ;;  %2954 = vst [vmem:[#allocation19_spill] sm:$0xff] %v2236_v36  ;;  %v1578_v17 = vpop.eup %1577  ;;  %vm819_vm1 = vcmp.eq.f32.partialorder %v2142_v3, 0.0  ;;  %1599 = vrsqrt.f32 %v2216_v25  ;;  %v2246_v19 = vmul.f32 -2.0, %v798_v12  ;;  %v820_v61 = vand.u32 2147483648, %v2142_v3 }
  0xd6   :  { %v1580_v30 = vpop.eup %1579  ;;  %vm824_vm2 = vcmp.eq.f32.partialorder %v2148_v57, inf  ;;  %1601 = vrsqrt.f32 %v2222_v1  ;;  %vm826_vm3 = vcmp.eq.f32.partialorder %v2148_v57, 0.0  ;;  %v827_v6 = vand.u32 2147483648, %v2148_v57 }
  0xd7   :  { %v2251_v62 = vpop.eup %1581  ;;  %vm831_vm4 = vcmp.eq.f32.partialorder %v2155_v31, inf  ;;  %1603 = vrsqrt.f32 %v2231_v56  ;;  %v816_v2 = vmul.f32 %v1578_v17, %v2142_v3  ;;  %vm833_vm5 = vcmp.eq.f32.partialorder %v2155_v31, 0.0 }
  0xd8   :  { %v1584_v15 = vpop.eup %1583  ;;  %v834_v41 = vand.u32 2147483648, %v2155_v31  ;;  %1605 = vrsqrt.f32 %v2238_v18  ;;  %v823_v60 = vmul.f32 %v1580_v30, %v2148_v57  ;;  %vm838_vm6 = vcmp.eq.f32.partialorder %v2159_v50, inf }
  0xd9   :  { %v1586_v7 = vpop.eup %1585  ;;  %vm840_vm7 = vcmp.eq.f32.partialorder %v2159_v50, 0.0  ;;  %1607 = vrsqrt.f32 %v2241_v52  ;;  %v841_v5 = vand.u32 2147483648, %v2159_v50  ;;  %vm845_vm8 = vcmp.eq.f32.partialorder %v2163_v23, inf }
  0xda   :  { %v1588_v59 = vpop.eup %1587  ;;  %vm847_vm9 = vcmp.eq.f32.partialorder %v2163_v23, 0.0  ;;  %1609 = vrsqrt.f32 %v2246_v19  ;;  %v830_v29 = vmul.f32 %v1584_v15, %v2155_v31  ;;  %v848_v4 = vand.u32 2147483648, %v2163_v23 }
  0xdb   :  { %vm852_vm10 = vcmp.eq.f32.partialorder %v2174_v55, inf  ;;  %v818_v38 = vsel %vm817_vm0, %v2142_v3, %v816_v2  ;;  %v837_v8 = vmul.f32 %v1586_v7, %v2159_v50  ;;  %v855_v12 = vand.u32 2147483648, %v2174_v55 }
  0xdc   :  { %v1590_v63 = vpop.eup %1589  ;;  %vm859_vm12 = vcmp.eq.f32.partialorder %v2188_v27, inf  ;;  %v825_v17 = vsel %vm824_vm2, %v2148_v57, %v823_v60  ;;  %v844_v30 = vmul.f32 %v1588_v59, %v2163_v23  ;;  %vm861_vm13 = vcmp.eq.f32.partialorder %v2188_v27, 0.0 }
  0xdd   :  { %v862_v15 = vand.u32 2147483648, %v2188_v27  ;;  %vm866_vm14 = vcmp.eq.f32.partialorder %v2197_v10, inf  ;;  %v869_v2 = vand.u32 2147483648, %v2197_v10  ;;  %vm873_vm0 = vcmp.eq.f32.partialorder %v2202_v9, inf }
  0xde   :  { %v1592_v36 = vpop.eup %1591  ;;  %vm880_vm11 = vcmp.eq.f32.partialorder %v2211_v43, inf  ;;  %v2293_v59 = vsel %vm819_vm1, %v820_v61, %v818_v38  ;;  %v832_v47 = vsel %vm831_vm4, %v2155_v31, %v830_v29  ;;  %v851_v46 = vmul.f32 %v1590_v63, %v2174_v55 }
  0xdf   :  { %v1594_v60 = vpop.eup %1593  ;;  %vm875_vm2 = vcmp.eq.f32.partialorder %v2202_v9, 0.0  ;;  %v883_v54 = vand.u32 2147483648, %v2211_v43  ;;  %v2303_v7 = vsel %vm826_vm3, %v827_v6, %v825_v17  ;;  %v839_v3 = vsel %vm838_vm6, %v2159_v50, %v837_v8 }
  0xe0   :  { %v1596_v34 = vpop.eup %1595  ;;  %vm882_vm1 = vcmp.eq.f32.partialorder %v2211_v43, 0.0  ;;  %vm887_vm15 = vcmp.eq.f32.partialorder %v2216_v25, inf  ;;  %v846_v63 = vsel %vm845_vm8, %v2163_v23, %v844_v30  ;;  %v858_v38 = vmul.f32 %v1592_v36, %v2188_v27 }
  0xe1   :  { %v1598_v29 = vpop.eup %1597  ;;  %vm894_vm3 = vcmp.eq.f32.partialorder %v2222_v1, inf  ;;  %v2319_v8 = vsel %vm833_vm5, %v834_v41, %v832_v47  ;;  %v865_v17 = vmul.f32 %v1594_v60, %v2197_v10  ;;  %vm901_vm4 = vcmp.eq.f32.partialorder %v2231_v56, inf }
  0xe2   :  { %v1600_v6 = vpop.eup %1599  ;;  %v904_v61 = vand.u32 2147483648, %v2231_v56  ;;  %v2326_v30 = vsel %vm840_vm7, %v841_v5, %v839_v3  ;;  %v853_v36 = vsel %vm852_vm10, %v2174_v55, %v851_v46  ;;  %v872_v57 = vmul.f32 %v1596_v34, %v2202_v9 }
  0xe3   :  { %v1602_v40 = vpop.eup %1601  ;;  %v2336_v47 = vsel %vm847_vm9, %v848_v4, %v846_v63  ;;  %v879_v41 = vmul.f32 %v1598_v29, %v2211_v43  ;;  %vm896_vm7 = vcmp.eq.f32.partialorder %v2222_v1, 0.0  ;;  %v911_v50 = vand.u32 2147483648, %v2238_v18 }
  0xe4   :  { %v1604_v31 = vpop.eup %1603  ;;  %vm915_vm10 = vcmp.eq.f32.partialorder %v2241_v52, inf  ;;  %v860_v46 = vsel %vm859_vm12, %v2188_v27, %v858_v38  ;;  %vm910_vm5 = vcmp.eq.f32.partialorder %v2238_v18, 0.0  ;;  %vm917_vm9 = vcmp.eq.f32.partialorder %v2241_v52, 0.0 }
  0xe5   :  { %v1606_v34 = vpop.eup %1605  ;;  %v918_v23 = vand.u32 2147483648, %v2241_v52  ;;  %vm922_vm6 = vcmp.eq.f32.partialorder %v2246_v19, inf  ;;  %v925_v5 = vand.u32 2147483648, %v2246_v19  ;;  %vm2955_vm8 = vcmp.eq.f32.partialorder %v2174_v55, 0.0 }
  0xe6   :  { %v1608_v4 = vpop.eup %1607  ;;  %v2353_v60 = vsel %vm2955_vm8, %v855_v12, %v853_v36  ;;  %v867_v3 = vsel %vm866_vm14, %v2197_v10, %v865_v17  ;;  %vm924_vm12 = vcmp.eq.f32.partialorder %v2246_v19, 0.0  ;;  %v927_v29 = vmul.f32 -0.007784894, %v2293_v59 }
  0xe7   :  { %v928_v63 = vmul.f32 -0.007784894, %v2303_v7  ;;  %v1610_v38 = vpop.eup %1609  ;;  %v874_v35 = vsel %vm873_vm0, %v2202_v9, %v872_v57  ;;  %v886_v26 = vmul.f32 %v1600_v6, %v2216_v25  ;;  %v929_v55 = vmul.f32 -0.007784894, %v2319_v8 }
  0xe8   :  { %v930_v12 = vmul.f32 -0.007784894, %v2326_v30  ;;  %v2369_v17 = vsel %vm861_vm13, %v862_v15, %v860_v46  ;;  %v881_v36 = vsel %vm880_vm11, %v2211_v43, %v879_v41  ;;  %v893_v53 = vmul.f32 %v1602_v40, %v2222_v1 }
  0xe9   :  { %v900_v16 = vmul.f32 %v1604_v31, %v2231_v56  ;;  %vm2956_vm14 = vcmp.eq.f32.partialorder %v2197_v10, 0.0  ;;  %v907_v6 = vmul.f32 %v1606_v34, %v2238_v18  ;;  %v914_v33 = vmul.f32 %v1608_v4, %v2241_v52 }
  0xea   :  { %v2378_v57 = vsel %vm2956_vm14, %v869_v2, %v867_v3  ;;  %v931_v27 = vmul.f32 -0.007784894, %v2336_v47  ;;  %v2957_v15 = vand.u32 2147483648, %v2202_v9  ;;  %v921_v40 = vmul.f32 %v1610_v38, %v2246_v19 }
  0xeb   :  { %v932_v31 = vmul.f32 -0.007784894, %v2353_v60  ;;  %v933_v10 = vmul.f32 -0.007784894, %v2369_v17  ;;  %v2394_v2 = vsel %vm882_vm1, %v883_v54, %v881_v36  ;;  %v888_v41 = vsel %vm887_vm15, %v2216_v25, %v886_v26 }
  0xec   :  { %v2387_v46 = vsel %vm875_vm2, %v2957_v15, %v874_v35  ;;  %v934_v34 = vmul.f32 -0.007784894, %v2378_v57  ;;  %v895_v35 = vsel %vm894_vm3, %v2222_v1, %v893_v53  ;;  %v902_v4 = vsel %vm901_vm4, %v2231_v56, %v900_v16 }
  0xed   :  { %v935_v9 = vmul.f32 -0.007784894, %v2387_v46  ;;  %v943_v3 = vadd.f32 -0.32239646, %v927_v29  ;;  %v944_v43 = vadd.f32 -0.32239646, %v928_v63  ;;  %v916_v26 = vsel %vm915_vm10, %v2241_v52, %v914_v33 }
  0xee   :  { %vm2958_vm11 = vcmp.eq.f32.partialorder %v2238_v18, inf  ;;  %v936_v38 = vmul.f32 -0.007784894, %v2394_v2  ;;  %v945_v36 = vadd.f32 -0.32239646, %v929_v55  ;;  %v2959_v15 = vand.u32 2147483648, %v2216_v25 }
  0xef   :  { %v909_v54 = vsel %vm2958_vm11, %v2238_v18, %v907_v6  ;;  %vm2960_vm13 = vcmp.eq.f32.partialorder %v2216_v25, 0.0  ;;  %v923_v16 = vsel %vm922_vm6, %v2246_v19, %v921_v40  ;;  %v946_v29 = vadd.f32 -0.32239646, %v930_v12 }
  0xf0   :  { %v2418_v53 = vsel %vm2960_vm13, %v2959_v15, %v888_v41  ;;  %v947_v63 = vadd.f32 -0.32239646, %v931_v27  ;;  %v2961_v6 = vand.u32 2147483648, %v2222_v1  ;;  %vm2962_vm15 = vcmp.eq.f32.partialorder %v2231_v56, 0.0 }
  0xf1   :  { %v2431_v55 = vsel %vm2962_vm15, %v904_v61, %v902_v4  ;;  %v937_v25 = vmul.f32 -0.007784894, %v2418_v53  ;;  %v948_v41 = vadd.f32 -0.32239646, %v932_v31  ;;  %v2436_v15 = vsel %vm910_vm5, %v911_v50, %v909_v54 }
  0xf2   :  { %v2427_v33 = vsel %vm896_vm7, %v2961_v6, %v895_v35  ;;  %v2440_v12 = vsel %vm917_vm9, %v918_v23, %v916_v26  ;;  %v939_v1 = vmul.f32 -0.007784894, %v2431_v55  ;;  %v2446_v56 = vsel %vm924_vm12, %v925_v5, %v923_v16 }
  0xf3   :  { %v938_v27 = vmul.f32 -0.007784894, %v2427_v33  ;;  %v940_v61 = vmul.f32 -0.007784894, %v2436_v15  ;;  %v941_v40 = vmul.f32 -0.007784894, %v2440_v12  ;;  %v959_v52 = vmul.f32 %v943_v3, %v2293_v59 }
  0xf4   :  { %v949_v31 = vadd.f32 -0.32239646, %v933_v10  ;;  %v942_v18 = vmul.f32 -0.007784894, %v2446_v56  ;;  %v950_v50 = vadd.f32 -0.32239646, %v934_v34  ;;  %v960_v54 = vmul.f32 %v944_v43, %v2303_v7 }
  0xf5   :  { %v951_v35 = vadd.f32 -0.32239646, %v935_v9  ;;  %v952_v23 = vadd.f32 -0.32239646, %v936_v38  ;;  %v953_v4 = vadd.f32 -0.32239646, %v937_v25  ;;  %v961_v26 = vmul.f32 %v945_v36, %v2319_v8 }
  0xf6   :  { %v954_v19 = vadd.f32 -0.32239646, %v938_v27  ;;  %v955_v5 = vadd.f32 -0.32239646, %v939_v1  ;;  %v962_v16 = vmul.f32 %v946_v29, %v2326_v30  ;;  %v963_v6 = vmul.f32 %v947_v63, %v2336_v47 }
  0xf7   :  { %v956_v21 = vadd.f32 -0.32239646, %v940_v61  ;;  %v957_v10 = vadd.f32 -0.32239646, %v941_v40  ;;  %v964_v0 = vmul.f32 %v948_v41, %v2353_v60  ;;  %v965_v34 = vmul.f32 %v949_v31, %v2369_v17 }
  0xf8   :  { %v958_v9 = vadd.f32 -0.32239646, %v942_v18  ;;  %v966_v3 = vmul.f32 %v950_v50, %v2378_v57  ;;  %v967_v38 = vmul.f32 %v951_v35, %v2387_v46  ;;  %v975_v43 = vadd.f32 -2.4007583, %v959_v52 }
  0xf9   :  { %v968_v36 = vmul.f32 %v952_v23, %v2394_v2  ;;  %v969_v25 = vmul.f32 %v953_v4, %v2418_v53  ;;  %v976_v27 = vadd.f32 -2.4007583, %v960_v54  ;;  %v977_v29 = vadd.f32 -2.4007583, %v961_v26 }
  0xfa   :  { %v970_v63 = vmul.f32 %v954_v19, %v2427_v33  ;;  %v971_v1 = vmul.f32 %v955_v5, %v2431_v55  ;;  %v978_v61 = vadd.f32 -2.4007583, %v962_v16  ;;  %v979_v41 = vadd.f32 -2.4007583, %v963_v6 }
  0xfb   :  { %v972_v40 = vmul.f32 %v956_v21, %v2436_v15  ;;  %v973_v31 = vmul.f32 %v957_v10, %v2440_v12  ;;  %v980_v18 = vadd.f32 -2.4007583, %v964_v0  ;;  %v981_v50 = vadd.f32 -2.4007583, %v965_v34 }
  0xfc   :  { %v974_v35 = vmul.f32 %v958_v9, %v2446_v56  ;;  %v982_v52 = vadd.f32 -2.4007583, %v966_v3  ;;  %v983_v23 = vadd.f32 -2.4007583, %v967_v38  ;;  %v991_v4 = vmul.f32 %v975_v43, %v2293_v59 }
  0xfd   :  { %v984_v54 = vadd.f32 -2.4007583, %v968_v36  ;;  %v985_v26 = vadd.f32 -2.4007583, %v969_v25  ;;  %v992_v19 = vmul.f32 %v976_v27, %v2303_v7  ;;  %v993_v5 = vmul.f32 %v977_v29, %v2319_v8 }
  0xfe   :  { %v986_v16 = vadd.f32 -2.4007583, %v970_v63  ;;  %v987_v6 = vadd.f32 -2.4007583, %v971_v1  ;;  %v994_v21 = vmul.f32 %v978_v61, %v2326_v30  ;;  %v995_v10 = vmul.f32 %v979_v41, %v2336_v47 }
  0xff   :  { %v988_v0 = vadd.f32 -2.4007583, %v972_v40  ;;  %v989_v34 = vadd.f32 -2.4007583, %v973_v31  ;;  %v996_v9 = vmul.f32 %v980_v18, %v2353_v60  ;;  %v997_v3 = vmul.f32 %v981_v50, %v2369_v17 }
 0x100   :  { %v990_v38 = vadd.f32 -2.4007583, %v974_v35  ;;  %v998_v43 = vmul.f32 %v982_v52, %v2378_v57  ;;  %v999_v36 = vmul.f32 %v983_v23, %v2387_v46  ;;  %v1007_v25 = vadd.f32 -2.5497324, %v991_v4 }
 0x101   :  { %v1000_v27 = vmul.f32 %v984_v54, %v2394_v2  ;;  %v1001_v29 = vmul.f32 %v985_v26, %v2418_v53  ;;  %v1008_v63 = vadd.f32 -2.5497324, %v992_v19  ;;  %v1009_v1 = vadd.f32 -2.5497324, %v993_v5 }
 0x102   :  { %v1002_v61 = vmul.f32 %v986_v16, %v2427_v33  ;;  %v1003_v41 = vmul.f32 %v987_v6, %v2431_v55  ;;  %v1010_v40 = vadd.f32 -2.5497324, %v994_v21  ;;  %v1011_v31 = vadd.f32 -2.5497324, %v995_v10 }
 0x103   :  { %v1004_v18 = vmul.f32 %v988_v0, %v2436_v15  ;;  %v1005_v50 = vmul.f32 %v989_v34, %v2440_v12  ;;  %v1012_v35 = vadd.f32 -2.5497324, %v996_v9  ;;  %v1013_v52 = vadd.f32 -2.5497324, %v997_v3 }
 0x104   :  { %v1006_v23 = vmul.f32 %v990_v38, %v2446_v56  ;;  %v1014_v4 = vadd.f32 -2.5497324, %v998_v43  ;;  %v1015_v54 = vadd.f32 -2.5497324, %v999_v36  ;;  %v1023_v26 = vmul.f32 %v1007_v25, %v2293_v59 }
 0x105   :  { %v1016_v19 = vadd.f32 -2.5497324, %v1000_v27  ;;  %v1017_v5 = vadd.f32 -2.5497324, %v1001_v29  ;;  %v1024_v16 = vmul.f32 %v1008_v63, %v2303_v7  ;;  %v1025_v6 = vmul.f32 %v1009_v1, %v2319_v8 }
 0x106   :  { %v1018_v21 = vadd.f32 -2.5497324, %v1002_v61  ;;  %v1019_v10 = vadd.f32 -2.5497324, %v1003_v41  ;;  %v1026_v0 = vmul.f32 %v1010_v40, %v2326_v30  ;;  %v1027_v34 = vmul.f32 %v1011_v31, %v2336_v47 }
 0x107   :  { %v1020_v9 = vadd.f32 -2.5497324, %v1004_v18  ;;  %v1021_v3 = vadd.f32 -2.5497324, %v1005_v50  ;;  %v1028_v38 = vmul.f32 %v1012_v35, %v2353_v60  ;;  %v1029_v43 = vmul.f32 %v1013_v52, %v2369_v17 }
 0x108   :  { %v1022_v36 = vadd.f32 -2.5497324, %v1006_v23  ;;  %v1030_v25 = vmul.f32 %v1014_v4, %v2378_v57  ;;  %v1031_v27 = vmul.f32 %v1015_v54, %v2387_v46  ;;  %v1039_v29 = vadd.f32 4.3746643, %v1023_v26 }
 0x109   :  { %v1032_v63 = vmul.f32 %v1016_v19, %v2394_v2  ;;  %v1033_v1 = vmul.f32 %v1017_v5, %v2418_v53  ;;  %v1040_v61 = vadd.f32 4.3746643, %v1024_v16  ;;  %v1041_v41 = vadd.f32 4.3746643, %v1025_v6 }
 0x10a   :  { %v1034_v40 = vmul.f32 %v1018_v21, %v2427_v33  ;;  %v1035_v31 = vmul.f32 %v1019_v10, %v2431_v55  ;;  %v1042_v18 = vadd.f32 4.3746643, %v1026_v0  ;;  %v1043_v50 = vadd.f32 4.3746643, %v1027_v34 }
 0x10b   :  { %v1036_v35 = vmul.f32 %v1020_v9, %v2436_v15  ;;  %v1037_v52 = vmul.f32 %v1021_v3, %v2440_v12  ;;  %v1044_v23 = vadd.f32 4.3746643, %v1028_v38  ;;  %v1045_v4 = vadd.f32 4.3746643, %v1029_v43 }
 0x10c   :  { %v1038_v54 = vmul.f32 %v1022_v36, %v2446_v56  ;;  %v1046_v26 = vadd.f32 4.3746643, %v1030_v25  ;;  %v1047_v19 = vadd.f32 4.3746643, %v1031_v27  ;;  %v1055_v5 = vmul.f32 %v1039_v29, %v2293_v59 }
 0x10d   :  { %v1048_v16 = vadd.f32 4.3746643, %v1032_v63  ;;  %v1049_v6 = vadd.f32 4.3746643, %v1033_v1  ;;  %v1056_v21 = vmul.f32 %v1040_v61, %v2303_v7  ;;  %v1057_v10 = vmul.f32 %v1041_v41, %v2319_v8 }
 0x10e   :  { %v1050_v0 = vadd.f32 4.3746643, %v1034_v40  ;;  %v1051_v34 = vadd.f32 4.3746643, %v1035_v31  ;;  %v1058_v9 = vmul.f32 %v1042_v18, %v2326_v30  ;;  %v1059_v3 = vmul.f32 %v1043_v50, %v2336_v47 }
 0x10f   :  { %v1052_v38 = vadd.f32 4.3746643, %v1036_v35  ;;  %v1053_v43 = vadd.f32 4.3746643, %v1037_v52  ;;  %v1060_v36 = vmul.f32 %v1044_v23, %v2353_v60  ;;  %v1061_v25 = vmul.f32 %v1045_v4, %v2369_v17 }
 0x110   :  { %v1054_v27 = vadd.f32 4.3746643, %v1038_v54  ;;  %v1062_v29 = vmul.f32 %v1046_v26, %v2378_v57  ;;  %v1063_v63 = vmul.f32 %v1047_v19, %v2387_v46  ;;  %v2508_v1 = vadd.f32 2.938164, %v1055_v5 }
 0x111   :  { %v1064_v61 = vmul.f32 %v1048_v16, %v2394_v2  ;;  %v2511_v41 = vadd.f32 2.938164, %v1056_v21  ;;  %v2513_v40 = vadd.f32 2.938164, %v1057_v10  ;;  %v1087_v31 = vmul.f32 0.007784696, %v2293_v59 }
 0x112   :  { %2963 = vst [vmem:[#allocation39_spill] sm:$0xff] %v2508_v1  ;;  %v1065_v18 = vmul.f32 %v1049_v6, %v2418_v53  ;;  %v2517_v50 = vadd.f32 2.938164, %v1058_v9  ;;  %v2519_v35 = vadd.f32 2.938164, %v1059_v3  ;;  %v1066_v23 = vmul.f32 %v1050_v0, %v2427_v33 }
 0x113   :  { %2964 = vst [vmem:[#allocation40_spill] sm:$0xff] %v2511_v41  ;;  %2965 = vst [vmem:[#allocation20_spill] sm:$0xff] %v2513_v40  ;;  %v1088_v52 = vmul.f32 0.007784696, %v2303_v7  ;;  %v2523_v4 = vadd.f32 2.938164, %v1060_v36  ;;  %v1067_v19 = vmul.f32 %v1051_v34, %v2431_v55  ;;  %v2536_v21 = vmul.f32 %v2251_v62, %v2168_v37 }
 0x114   :  { %2966 = vst [vmem:[#allocation21_spill] sm:$0xff] %v2517_v50  ;;  %2967 = vst [vmem:[#allocation22_spill] sm:$0xff] %v2519_v35  ;;  %v2525_v54 = vadd.f32 2.938164, %v1061_v25  ;;  %v1089_v26 = vmul.f32 0.007784696, %v2319_v8  ;;  %v2542_v3 = vmul.f32 %v1052_v38, %v2436_v15 }
 0x115   :  { %2968 = vst [vmem:[#allocation23_spill] sm:$0xff] %v2523_v4  ;;  %v2529_v5 = vadd.f32 2.938164, %v1062_v29  ;;  %v2531_v16 = vadd.f32 2.938164, %v1063_v63  ;;  %2972 = vst [vmem:[#allocation28_spill] sm:$0xff] %v2536_v21  ;;  %v2548_v29 = vmul.f32 %v1053_v43, %v2440_v12 }
 0x116   :  { %2969 = vst [vmem:[#allocation24_spill] sm:$0xff] %v2525_v54  ;;  %v1090_v6 = vmul.f32 0.007784696, %v2326_v30  ;;  %v2538_v10 = vadd.f32 2.938164, %v1064_v61  ;;  %v2554_v61 = vmul.f32 %v1054_v27, %v2446_v56  ;;  %vm1247_vm0 = vcmp.lt.f32.partialorder %v2916_v13, 0.0 }
 0x117   :  { %2970 = vst [vmem:[#allocation25_spill] sm:$0xff] %v2529_v5  ;;  %2971 = vst [vmem:[#allocation26_spill] sm:$0xff] %v2531_v16  ;;  %v1091_v0 = vmul.f32 0.007784696, %v2336_v47  ;;  %v1103_v9 = vadd.f32 0.32246712, %v1087_v31 }
 0x118   :  { %2973 = vst [vmem:[#allocation30_spill] sm:$0xff] %v2538_v10  ;;  %v2544_v36 = vadd.f32 2.938164, %v1065_v18  ;;  %v1092_v34 = vmul.f32 0.007784696, %v2353_v60  ;;  %vm1248_vm2 = vcmp.lt.f32.partialorder %v2919_v48, 0.0 }
 0x119   :  { %v1104_v25 = vadd.f32 0.32246712, %v1088_v52  ;;  %v2550_v63 = vadd.f32 2.938164, %v1066_v23  ;;  %v1093_v37 = vmul.f32 0.007784696, %v2369_v17  ;;  %v1119_v43 = vmul.f32 %v1103_v9, %v2293_v59 }
 0x11a   :  { %2974 = vst [vmem:[#allocation31_spill] sm:$0xff] %v2544_v36  ;;  %v1105_v62 = vadd.f32 0.32246712, %v1089_v26  ;;  %v2556_v31 = vadd.f32 2.938164, %v1067_v19  ;;  %vm1249_vm1 = vcmp.lt.f32.partialorder %v2924_v20, 0.0 }
 0x11b   :  { %2975 = vst [vmem:[#allocation41_spill] sm:$0xff] %v2550_v63  ;;  %v1094_v38 = vmul.f32 0.007784696, %v2378_v57  ;;  %v1106_v18 = vadd.f32 0.32246712, %v1090_v6  ;;  %v1120_v27 = vmul.f32 %v1104_v25, %v2303_v7  ;;  %vm3015_vm3 = vcmp.lt.f32.partialorder %v2927_v32, 0.0 }
 0x11c   :  { %2976 = vst [vmem:[#allocation42_spill] sm:$0xff] %v2556_v31  ;;  %v1095_v21 = vmul.f32 0.007784696, %v2387_v46  ;;  %v1096_v52 = vmul.f32 0.007784696, %v2394_v2  ;;  %v1121_v6 = vmul.f32 %v1105_v62, %v2319_v8  ;;  %vm3020_vm4 = vcmp.lt.f32.partialorder %v2928_v22, 0.0 }
 0x11d   :  { %v1107_v36 = vadd.f32 0.32246712, %v1091_v0  ;;  %v1097_v23 = vmul.f32 0.007784696, %v2418_v53  ;;  %v1098_v63 = vmul.f32 0.007784696, %v2427_v33  ;;  %v1122_v9 = vmul.f32 %v1106_v18, %v2326_v30 }
 0x11e   :  { %v1108_v26 = vadd.f32 0.32246712, %v1092_v34  ;;  %v1099_v19 = vmul.f32 0.007784696, %v2431_v55  ;;  %v1100_v31 = vmul.f32 0.007784696, %v2436_v15 }
 0x11f   :  { %v1109_v10 = vadd.f32 0.32246712, %v1093_v37  ;;  %v1101_v16 = vmul.f32 0.007784696, %v2440_v12  ;;  %v1102_v0 = vmul.f32 0.007784696, %v2446_v56  ;;  %v1123_v34 = vmul.f32 %v1107_v36, %v2336_v47 }
 0x120   :  { %v1110_v11 = vadd.f32 0.32246712, %v1094_v38  ;;  %v1111_v5 = vadd.f32 0.32246712, %v1095_v21  ;;  %v1112_v44 = vadd.f32 0.32246712, %v1096_v52  ;;  %v1124_v35 = vmul.f32 %v1108_v26, %v2353_v60 }
 0x121   :  { %v1135_v54 = vadd.f32 2.4451342, %v1119_v43  ;;  %v1113_v25 = vadd.f32 0.32246712, %v1097_v23  ;;  %v1114_v4 = vadd.f32 0.32246712, %v1098_v63  ;;  %v1125_v62 = vmul.f32 %v1109_v10, %v2369_v17 }
 0x122   :  { %v1136_v50 = vadd.f32 2.4451342, %v1120_v27  ;;  %v1115_v37 = vadd.f32 0.32246712, %v1099_v19  ;;  %v1116_v40 = vadd.f32 0.32246712, %v1100_v31  ;;  %v1126_v38 = vmul.f32 %v1110_v11, %v2378_v57 }
 0x123   :  { %v1137_v41 = vadd.f32 2.4451342, %v1121_v6  ;;  %v1117_v1 = vadd.f32 0.32246712, %v1101_v16  ;;  %v1118_v42 = vadd.f32 0.32246712, %v1102_v0  ;;  %v1127_v21 = vmul.f32 %v1111_v5, %v2387_v46 }
 0x124   :  { %v1138_v18 = vadd.f32 2.4451342, %v1122_v9  ;;  %v1128_v36 = vmul.f32 %v1112_v44, %v2394_v2  ;;  %v1139_v52 = vadd.f32 2.4451342, %v1123_v34  ;;  %v1151_v63 = vmul.f32 %v1135_v54, %v2293_v59 }
 0x125   :  { %v1129_v43 = vmul.f32 %v1113_v25, %v2418_v53  ;;  %v1130_v23 = vmul.f32 %v1114_v4, %v2427_v33  ;;  %v1140_v31 = vadd.f32 2.4451342, %v1124_v35  ;;  %v1152_v10 = vmul.f32 %v1136_v50, %v2303_v7 }
 0x126   :  { %v1131_v16 = vmul.f32 %v1115_v37, %v2431_v55  ;;  %v1132_v26 = vmul.f32 %v1116_v40, %v2436_v15  ;;  %v1141_v11 = vadd.f32 2.4451342, %v1125_v62  ;;  %v1153_v27 = vmul.f32 %v1137_v41, %v2319_v8 }
 0x127   :  { %v1133_v5 = vmul.f32 %v1117_v1, %v2440_v12  ;;  %v1134_v44 = vmul.f32 %v1118_v42, %v2446_v56  ;;  %v1142_v19 = vadd.f32 2.4451342, %v1126_v38  ;;  %v1154_v54 = vmul.f32 %v1138_v18, %v2326_v30 }
 0x128   :  { %v1143_v6 = vadd.f32 2.4451342, %v1127_v21  ;;  %v1144_v0 = vadd.f32 2.4451342, %v1128_v36  ;;  %v1155_v35 = vmul.f32 %v1139_v52, %v2336_v47  ;;  %v1167_v4 = vadd.f32 3.7544086, %v1151_v63 }
 0x129   :  { %v1145_v50 = vadd.f32 2.4451342, %v1129_v43  ;;  %v1146_v9 = vadd.f32 2.4451342, %v1130_v23  ;;  %v1156_v34 = vmul.f32 %v1140_v31, %v2353_v60  ;;  %v1168_v40 = vadd.f32 3.7544086, %v1152_v10 }
 0x12a   :  { %v1147_v25 = vadd.f32 2.4451342, %v1131_v16  ;;  %v1148_v37 = vadd.f32 2.4451342, %v1132_v26  ;;  %v1157_v41 = vmul.f32 %v1141_v11, %v2369_v17  ;;  %v1169_v1 = vadd.f32 3.7544086, %v1153_v27 }
 0x12b   :  { %v1149_v62 = vadd.f32 2.4451342, %v1133_v5  ;;  %v1150_v42 = vadd.f32 2.4451342, %v1134_v44  ;;  %v1158_v38 = vmul.f32 %v1142_v19, %v2378_v57  ;;  %v1170_v18 = vadd.f32 3.7544086, %v1154_v54 }
 0x12c   :  { %v1159_v21 = vmul.f32 %v1143_v6, %v2387_v46  ;;  %v1160_v36 = vmul.f32 %v1144_v0, %v2394_v2  ;;  %v1171_v52 = vadd.f32 3.7544086, %v1155_v35  ;;  %v1183_v63 = vmul.f32 %v1167_v4, %v2293_v59 }
 0x12d   :  { %v1161_v43 = vmul.f32 %v1145_v50, %v2418_v53  ;;  %v1162_v23 = vmul.f32 %v1146_v9, %v2427_v33  ;;  %v1172_v31 = vadd.f32 3.7544086, %v1156_v34  ;;  %v1184_v10 = vmul.f32 %v1168_v40, %v2303_v7 }
 0x12e   :  { %v1163_v16 = vmul.f32 %v1147_v25, %v2431_v55  ;;  %v1164_v26 = vmul.f32 %v1148_v37, %v2436_v15  ;;  %v1173_v11 = vadd.f32 3.7544086, %v1157_v41  ;;  %v1185_v27 = vmul.f32 %v1169_v1, %v2319_v8 }
 0x12f   :  { %v1165_v5 = vmul.f32 %v1149_v62, %v2440_v12  ;;  %v1166_v44 = vmul.f32 %v1150_v42, %v2446_v56  ;;  %v1174_v19 = vadd.f32 3.7544086, %v1158_v38  ;;  %v1186_v59 = vmul.f32 %v1170_v18, %v2326_v30 }
 0x130   :  { %v1175_v54 = vadd.f32 3.7544086, %v1159_v21  ;;  %v1176_v6 = vadd.f32 3.7544086, %v1160_v36  ;;  %v1187_v0 = vmul.f32 %v1171_v52, %v2336_v47  ;;  %v1199_v35 = vadd.f32 1.0, %v1183_v63 }
 0x131   :  { %v1177_v7 = vadd.f32 3.7544086, %v1161_v43  ;;  %v1178_v4 = vadd.f32 3.7544086, %v1162_v23  ;;  %v1188_v50 = vmul.f32 %v1172_v31, %v2353_v60  ;;  %v1200_v9 = vadd.f32 1.0, %v1184_v10 }
 0x132   :  { %v1179_v34 = vadd.f32 3.7544086, %v1163_v16  ;;  %v1180_v40 = vadd.f32 3.7544086, %v1164_v26  ;;  %v1189_v8 = vmul.f32 %v1173_v11, %v2369_v17  ;;  %v1201_v25 = vadd.f32 1.0, %v1185_v27 }
 0x133   :  { %v1181_v37 = vadd.f32 3.7544086, %v1165_v5  ;;  %v1182_v41 = vadd.f32 3.7544086, %v1166_v44  ;;  %v1190_v1 = vmul.f32 %v1174_v19, %v2378_v57  ;;  %v1202_v30 = vadd.f32 1.0, %v1186_v59  ;;  %v2977_v19 = vld [vmem:[#allocation27_spill] sm:$0xff] }
 0x134   :  { %v1191_v62 = vmul.f32 %v1175_v54, %v2387_v46  ;;  %v1192_v47 = vmul.f32 %v1176_v6, %v2394_v2  ;;  %v1203_v42 = vadd.f32 1.0, %v1187_v0  ;;  %1611 = vrcp.f32 %v1199_v35  ;;  %v2978_v6 = vld [vmem:[#allocation29_spill] sm:$0xff] }
 0x135   :  { %v1193_v38 = vmul.f32 %v1177_v7, %v2418_v53  ;;  %v1194_v60 = vmul.f32 %v1178_v4, %v2427_v33  ;;  %v1204_v18 = vadd.f32 1.0, %v1188_v50  ;;  %1613 = vrcp.f32 %v1200_v9  ;;  %v2979_v50 = vld [vmem:[#allocation32_spill] sm:$0xff] }
 0x136   :  { %v1195_v17 = vmul.f32 %v1179_v34, %v2431_v55  ;;  %v1196_v21 = vmul.f32 %v1180_v40, %v2436_v15  ;;  %v1205_v36 = vadd.f32 1.0, %v1189_v8  ;;  %1615 = vrcp.f32 %v1201_v25  ;;  %v2982_v8 = vld [vmem:[#allocation39_spill] sm:$0xff] }
 0x137   :  { %v1197_v57 = vmul.f32 %v1181_v37, %v2440_v12  ;;  %v1198_v46 = vmul.f32 %v1182_v41, %v2446_v56  ;;  %v1206_v52 = vadd.f32 1.0, %v1190_v1  ;;  %1617 = vrcp.f32 %v1202_v30  ;;  %v2987_v30 = vld [vmem:[#allocation40_spill] sm:$0xff]  ;;  %v3029_v41 = vld [vmem:[#allocation31_spill] sm:$0xff] }
 0x138   :  { %v2616_v2 = vadd.f32 2.938164, %v2542_v3  ;;  %v2619_v53 = vadd.f32 2.938164, %v2548_v29  ;;  %v1207_v33 = vadd.f32 1.0, %v1191_v62  ;;  %1619 = vrcp.f32 %v1203_v42  ;;  %v3037_v42 = vld [vmem:[#allocation17_spill] sm:$0xff] }
 0x139   :  { %v2622_v55 = vadd.f32 2.938164, %v2554_v61  ;;  %v1208_v15 = vadd.f32 1.0, %v1192_v47  ;;  %v1209_v63 = vadd.f32 1.0, %v1193_v38  ;;  %1621 = vrcp.f32 %v1204_v18  ;;  %v3034_v47 = vld [vmem:[#allocation16_spill] sm:$0xff] }
 0x13a   :  { %v1210_v43 = vadd.f32 1.0, %v1194_v60  ;;  %v1211_v12 = vadd.f32 1.0, %v1195_v17  ;;  %v1212_v23 = vadd.f32 1.0, %v1196_v21  ;;  %1623 = vrcp.f32 %v1205_v36  ;;  %v2992_v60 = vld [vmem:[#allocation20_spill] sm:$0xff]  ;;  %v3039_v21 = vld [vmem:[#allocation33_spill] sm:$0xff]  ;;  %v3041_v36 = vld [vmem:[#allocation34_spill] sm:$0xff] }
 0x13b   :  { %v1213_v56 = vadd.f32 1.0, %v1197_v57  ;;  %v1214_v31 = vadd.f32 1.0, %v1198_v46  ;;  %1625 = vrcp.f32 %v1206_v52  ;;  %v1295_v3 = vand.u32 2147483647, %v2916_v13  ;;  %v2997_v46 = vld [vmem:[#allocation21_spill] sm:$0xff] }
 0x13c   :  { %1627 = vrcp.f32 %v1207_v33  ;;  %v1296_v29 = vand.u32 2147483647, %v2919_v48  ;;  %v1297_v61 = vand.u32 2147483647, %v2924_v20  ;;  %v1298_v10 = vand.u32 2147483647, %v2927_v32 }
 0x13d   :  { %1629 = vrcp.f32 %v1208_v15  ;;  %v1299_v16 = vand.u32 2147483647, %v2928_v22  ;;  %v1300_v26 = vand.u32 2147483647, %v2929_v14  ;;  %v1301_v11 = vand.u32 2147483647, %v2930_v39 }
 0x13e   :  { %1631 = vrcp.f32 %v1209_v63  ;;  %v1302_v27 = vand.u32 2147483647, %v2931_v51  ;;  %v1303_v5 = vand.u32 2147483647, %v2932_v58  ;;  %v1304_v44 = vand.u32 2147483647, %v2933_v49 }
 0x13f   :  { %1633 = vrcp.f32 %v1210_v43  ;;  %v1305_v59 = vand.u32 2147483647, %v2977_v19  ;;  %v1306_v54 = vand.u32 2147483647, %v2935_v45  ;;  %v1307_v0 = vand.u32 2147483647, %v2978_v6 }
 0x140   :  { %1635 = vrcp.f32 %v1211_v12  ;;  %v1308_v35 = vand.u32 2147483647, %v2937_v24  ;;  %v1309_v4 = vand.u32 2147483647, %v2938_v28  ;;  %v1310_v9 = vand.u32 2147483647, %v2979_v50 }
 0x141   :  { %v1612_v7 = vpop.eup %1611  ;;  %1637 = vrcp.f32 %v1212_v23  ;;  %vm2647_vm7 = vcmp.le.f32.partialorder %v1295_v3, 0.47575  ;;  %vm2653_vm10 = vcmp.le.f32.partialorder %v1296_v29, 0.47575  ;;  %vm2657_vm9 = vcmp.le.f32.partialorder %v1297_v61, 0.47575 }
 0x142   :  { %v1614_v40 = vpop.eup %1613  ;;  %v1216_v25 = vmul.f32 %v1612_v7, %v2982_v8  ;;  %1639 = vrcp.f32 %v1213_v56  ;;  %vm2663_vm14 = vcmp.le.f32.partialorder %v1298_v10, 0.47575  ;;  %vm2667_vm11 = vcmp.le.f32.partialorder %v1299_v16, 0.47575  ;;  %v3002_v12 = vld [vmem:[#allocation22_spill] sm:$0xff]  ;;  %v3005_v61 = vld [vmem:[#allocation23_spill] sm:$0xff] }
 0x143   :  { %v1616_v1 = vpop.eup %1615  ;;  %v1218_v62 = vmul.f32 %v1614_v40, %v2987_v30  ;;  %1641 = vrcp.f32 %v1214_v31  ;;  %vm2673_vm15 = vcmp.le.f32.partialorder %v1300_v26, 0.47575  ;;  %vm2677_vm8 = vcmp.le.f32.partialorder %v1301_v11, 0.47575  ;;  %v3046_v63 = vld [vmem:[#allocation36_spill] sm:$0xff] }
 0x144   :  { %v1618_v38 = vpop.eup %1617  ;;  %v1220_v18 = vmul.f32 %v1616_v1, %v2992_v60  ;;  %v1263_v17 = vsub.f32 0.0, %v1216_v25  ;;  %vm2683_vm6 = vcmp.le.f32.partialorder %v1302_v27, 0.47575  ;;  %vm2687_vm13 = vcmp.le.f32.partialorder %v1303_v5, 0.47575  ;;  %v3010_v5 = vld [vmem:[#allocation24_spill] sm:$0xff] }
 0x145   :  { %v1620_v57 = vpop.eup %1619  ;;  %v1222_v52 = vmul.f32 %v1618_v38, %v2997_v46  ;;  %v1264_v33 = vsub.f32 0.0, %v1218_v62  ;;  %vm2697_vm12 = vcmp.le.f32.partialorder %v1304_v44, 0.47575  ;;  %vm2707_vm5 = vcmp.le.f32.partialorder %v1305_v59, 0.47575  ;;  %v3013_v59 = vld [vmem:[#allocation11_spill] sm:$0xff] }
 0x146   :  { %v1622_v43 = vpop.eup %1621  ;;  %v1224_v23 = vmul.f32 %v1620_v57, %v3002_v12  ;;  %v1265_v56 = vsub.f32 0.0, %v1220_v18  ;;  %v2695_v31 = vsel %vm1247_vm0, %v1216_v25, %v1263_v17  ;;  %vm2711_vm0 = vcmp.le.f32.partialorder %v1306_v54, 0.47575  ;;  %v3014_v25 = vld [vmem:[#allocation25_spill] sm:$0xff]  ;;  %v3019_v60 = vld [vmem:[#allocation26_spill] sm:$0xff] }
 0x147   :  { %v1624_v29 = vpop.eup %1623  ;;  %v1226_v10 = vmul.f32 %v1622_v43, %v3005_v61  ;;  %v1266_v16 = vsub.f32 0.0, %v1222_v52  ;;  %v2705_v26 = vsel %vm1248_vm2, %v1218_v62, %v1264_v33  ;;  %vm2721_vm2 = vcmp.le.f32.partialorder %v1307_v0, 0.47575  ;;  %v3018_v0 = vld [vmem:[#allocation12_spill] sm:$0xff] }
 0x148   :  { %v1626_v27 = vpop.eup %1625  ;;  %v1228_v44 = vmul.f32 %v1624_v29, %v3010_v5  ;;  %v1267_v7 = vsub.f32 0.0, %v1224_v23  ;;  %v2719_v40 = vsel %vm1249_vm1, %v1220_v18, %v1265_v56  ;;  %v3011_v48 = vmov 0 }
 0x149   :  { %v3012_v48 = vsel %vm2721_vm2, 4294967295, %v3011_v48  ;;  %v1327_v54 = vsel %vm2647_vm7, %v3013_v59, %v2695_v31  ;;  %v1628_v8 = vpop.eup %1627  ;;  %v1230_v1 = vmul.f32 %v1626_v27, %v3014_v25  ;;  %v1268_v30 = vsub.f32 0.0, %v1226_v10  ;;  %v3035_v59 = vld [vmem:[#allocation42_spill] sm:$0xff] }
 0x14a   :  { %v1282_v20 = vsel %vm3015_vm3, %v1222_v52, %v1266_v16  ;;  %vm2733_vm1 = vcmp.le.f32.partialorder %v1308_v35, 0.47575  ;;  %v1328_v38 = vsel %vm2653_vm10, %v3018_v0, %v2705_v26  ;;  %v1630_v34 = vpop.eup %1629  ;;  %v1232_v18 = vmul.f32 %v1628_v8, %v3019_v60  ;;  %v3023_v35 = vld [vmem:[#allocation13_spill] sm:$0xff]  ;;  %v3024_v52 = vld [vmem:[#allocation30_spill] sm:$0xff]  ;;  %v3031_v16 = vld [vmem:[#allocation15_spill] sm:$0xff] }
 0x14b   :  { %vm1262_vm7 = vcmp.lt.f32.partialorder %v2979_v50, 0.0  ;;  %v1269_v17 = vsub.f32 0.0, %v1228_v44  ;;  %v1283_v57 = vsel %vm3020_vm4, %v1224_v23, %v1267_v7  ;;  %vm2745_vm2 = vcmp.le.f32.partialorder %v1309_v4, 0.47575  ;;  %v1632_v37 = vpop.eup %1631  ;;  %v3028_v4 = vld [vmem:[#allocation14_spill] sm:$0xff] }
 0x14c   :  { %v1329_v46 = vsel %vm2657_vm9, %v3023_v35, %v2719_v40  ;;  %v1234_v33 = vmul.f32 %v1630_v34, %v3024_v52  ;;  %v1270_v43 = vsub.f32 0.0, %v1230_v1  ;;  %vm3025_vm3 = vcmp.lt.f32.partialorder %v2929_v14, 0.0  ;;  %v1634_v56 = vpop.eup %1633  ;;  %v3043_v35 = vld [vmem:[#allocation18_spill] sm:$0xff] }
 0x14d   :  { %v1284_v12 = vsel %vm3025_vm3, %v1226_v10, %v1268_v30  ;;  %vm2758_vm10 = vcmp.le.f32.partialorder %v1310_v9, 0.47575  ;;  %v1330_v23 = vsel %vm2663_vm14, %v3028_v4, %v1282_v20  ;;  %v1236_v31 = vmul.f32 %v1632_v37, %v3029_v41  ;;  %v1636_v10 = vpop.eup %1635  ;;  %v3032_v9 = vld [vmem:[#allocation41_spill] sm:$0xff]  ;;  %v3051_v4 = vld [vmem:[#allocation38_spill] sm:$0xff] }
 0x14e   :  { %v1271_v29 = vsub.f32 0.0, %v1232_v18  ;;  %vm3030_vm4 = vcmp.lt.f32.partialorder %v2930_v39, 0.0  ;;  %v1331_v14 = vsel %vm2667_vm11, %v3031_v16, %v1283_v57  ;;  %v1238_v26 = vmul.f32 %v1634_v56, %v3032_v9  ;;  %v1638_v40 = vpop.eup %1637 }
 0x14f   :  { %v1285_v61 = vsel %vm3030_vm4, %v1228_v44, %v1269_v17  ;;  %v1272_v27 = vsub.f32 0.0, %v1234_v33  ;;  %vm3033_vm9 = vcmp.lt.f32.partialorder %v2931_v51, 0.0  ;;  %v1332_v7 = vsel %vm2673_vm15, %v3034_v47, %v1284_v12  ;;  %v1640_v30 = vpop.eup %1639 }
 0x150   :  { %v1286_v5 = vsel %vm3033_vm9, %v1230_v1, %v1270_v43  ;;  %v1240_v8 = vmul.f32 %v1636_v10, %v3035_v59  ;;  %v1273_v39 = vsub.f32 0.0, %v1236_v31  ;;  %vm3036_vm14 = vcmp.lt.f32.partialorder %v2932_v58, 0.0  ;;  %v1642_v34 = vpop.eup %1641  ;;  %v3048_v43 = vld [vmem:[#allocation37_spill] sm:$0xff] }
 0x151   :  { %v1287_v44 = vsel %vm3036_vm14, %v1232_v18, %v1271_v29  ;;  %v1333_v25 = vsel %vm2677_vm8, %v3037_v42, %v1285_v61  ;;  %v1242_v20 = vmul.f32 %v1638_v40, %v2616_v2  ;;  %v1274_v51 = vsub.f32 0.0, %v1238_v26  ;;  %v3053_v61 = vld [vmem:[#allocation28_spill] sm:$0xff]  ;;  %v3054_v42 = vld [vmem:[#allocation10_spill] sm:$0xff] }
 0x152   :  { %vm3038_vm11 = vcmp.lt.f32.partialorder %v2933_v49, 0.0  ;;  %v1334_v0 = vsel %vm2683_vm6, %v3039_v21, %v1286_v5  ;;  %v1244_v60 = vmul.f32 %v1640_v30, %v2619_v53  ;;  %v1275_v58 = vsub.f32 0.0, %v1240_v8 }
 0x153   :  { %v1288_v1 = vsel %vm3038_vm11, %v1234_v33, %v1272_v27  ;;  %vm3040_vm15 = vcmp.lt.f32.partialorder %v2977_v19, 0.0  ;;  %v1335_v17 = vsel %vm2687_vm13, %v3041_v36, %v1287_v44  ;;  %v1246_v2 = vmul.f32 %v1642_v34, %v2622_v55  ;;  %v3045_v19 = vld [vmem:[#allocation35_spill] sm:$0xff] }
 0x154   :  { %v1289_v18 = vsel %vm3040_vm15, %v1236_v31, %v1273_v39  ;;  %v1276_v57 = vsub.f32 0.0, %v1242_v20  ;;  %vm3042_vm8 = vcmp.lt.f32.partialorder %v2935_v45, 0.0  ;;  %v1336_v15 = vsel %vm2697_vm12, %v3043_v35, %v1288_v1  ;;  %v3052_v31 = vld [vmem:[#allocation19_spill] sm:$0xff] }
 0x155   :  { %v1290_v49 = vsel %vm3042_vm8, %v1238_v26, %v1274_v51  ;;  %v1277_v37 = vsub.f32 0.0, %v1244_v60  ;;  %vm3044_vm6 = vcmp.lt.f32.partialorder %v2978_v6, 0.0  ;;  %v1337_v52 = vsel %vm2707_vm5, %v3045_v19, %v1289_v18 }
 0x156   :  { %v1291_v53 = vsel %vm3044_vm6, %v1240_v8, %v1275_v58  ;;  %v1338_v55 = vsel %vm2711_vm0, %v3046_v63, %v1290_v49  ;;  %v1278_v33 = vsub.f32 0.0, %v1246_v2  ;;  %vm3047_vm13 = vcmp.lt.f32.partialorder %v2937_v24, 0.0  ;;  %v1359_v49 = vld [vmem:[#allocation4] sm:$0xff] }
 0x157   :  { %v1292_v45 = vsel %vm3047_vm13, %v1242_v20, %v1276_v57  ;;  %vm3049_vm3 = vnez %v3012_v48  ;;  %v1343_v12 = vmul.f32 0.005, %v1327_v54  ;;  %vm3050_vm12 = vcmp.lt.f32.partialorder %v2938_v28, 0.0 }
 0x158   :  { %v1339_v3 = vsel %vm3049_vm3, %v3048_v43, %v1291_v53  ;;  %v1293_v6 = vsel %vm3050_vm12, %v1244_v60, %v1277_v37  ;;  %v1340_v11 = vsel %vm2733_vm1, %v3051_v4, %v1292_v45  ;;  %v1344_v56 = vmul.f32 0.005, %v1328_v38  ;;  %v1360_v37 = vld [vmem:[#allocation4 + $0x8] sm:$0xff] }
 0x159   :  { %v1345_v41 = vmul.f32 0.005, %v1329_v46  ;;  %v1294_v13 = vsel %vm1262_vm7, %v1246_v2, %v1278_v33  ;;  %v1341_v24 = vsel %vm2745_vm2, %v3052_v31, %v1293_v6  ;;  %v1346_v29 = vmul.f32 0.005, %v1330_v23 }
 0x15a   :  { %v1347_v48 = vmul.f32 0.005, %v1331_v14  ;;  %v1342_v28 = vsel %vm2758_vm10, %v3053_v61, %v1294_v13  ;;  %v1348_v54 = vmul.f32 0.005, %v1332_v7  ;;  %v1349_v16 = vmul.f32 0.005, %v1333_v25 }
 0x15b   :  { %v1350_v10 = vmul.f32 0.005, %v1334_v0  ;;  %v1351_v62 = vmul.f32 0.005, %v1335_v17  ;;  %v1352_v9 = vmul.f32 0.005, %v1336_v15  ;;  %v1377_v40 = vcombine.low %v1343_v12, %v1344_v56 }
 0x15c   :  { %v1353_v38 = vmul.f32 0.005, %v1337_v52  ;;  %v1354_v46 = vmul.f32 0.005, %v1338_v55  ;;  %v1355_v26 = vmul.f32 0.005, %v1339_v3  ;;  %v1378_v23 = vcombine.low %v1345_v41, %v1346_v29 }
 0x15d   :  { %v1356_v50 = vmul.f32 0.005, %v1340_v11  ;;  %v1357_v27 = vmul.f32 0.005, %v1341_v24  ;;  %v1358_v5 = vmul.f32 0.005, %v1342_v28  ;;  %v1379_v14 = vcombine.low %v1347_v48, %v1348_v54 }
 0x15e   :  { %v1688_v47 = vmov 1966171168   ;;  %v1380_v59 = vcombine.low %v1349_v16, %v1350_v10  ;;  %v1426_v22 = vcombine.low %v1351_v62, %v1352_v9  ;;  %v1427_v39 = vcombine.low %v1353_v38, %v1354_v46 }
 0x15f   :  { %v1382_v32 = vunpack.c.l.s4 %v1688_v47  ;;  %v1428_v7 = vcombine.low %v1355_v26, %v1356_v50  ;;  %v1429_v44 = vcombine.low %v1357_v27, %v1358_v5 }
 0x161   :  { %v1383_v8 = vunpack.c.0.s8 %v1382_v32 }
 0x163   :  { %v1386_v25 = vsub.s32 %v1383_v8, %v3054_v42 }
 0x165   :  { %v1387_v30 = vrot.slane %v1377_v40, %v1386_v25  ;;  %v1394_v20 = vrot.slane %v1378_v23, %v1386_v25  ;;  %v1401_v51 = vrot.slane %v1379_v14, %v1386_v25  ;;  %v1408_v1 = vrot.slane %v1380_v59, %v1386_v25 }
 0x166   :  { %v1436_v21 = vrot.slane %v1426_v22, %v1386_v25  ;;  %v1443_v0 = vrot.slane %v1427_v39, %v1386_v25  ;;  %v1450_v34 = vrot.slane %v1428_v7, %v1386_v25  ;;  %v1457_v60 = vrot.slane %v1429_v44, %v1386_v25 }
 0x167   :  { %v1409_v58 = vcombine.low %v1387_v30, %v1394_v20  ;;  %v1410_v18 = vcombine.low %v1401_v51, %v1408_v1 }
 0x168   :  { %v1458_v36 = vcombine.low %v1436_v21, %v1443_v0  ;;  %v1459_v17 = vcombine.low %v1450_v34, %v1457_v60 }
 0x169   :  { %v1417_v2 = vrot.slane %v1409_v58, %v1386_v25  ;;  %v1424_v57 = vrot.slane %v1410_v18, %v1386_v25 }
 0x16a   :  { %v1466_v35 = vrot.slane %v1458_v36, %v1386_v25  ;;  %v1473_v15 = vrot.slane %v1459_v17, %v1386_v25 }
 0x16b   :  { %v1425_v53 = vcombine.low %v1417_v2, %v1424_v57 }
 0x16c   :  { %v1474_v19 = vcombine.low %v1466_v35, %v1473_v15 }
 0x16d   :  { %v1477_v52 = vadd.f32 %v1425_v53, %v1359_v49 }
 0x16e   :  { %v1478_v63 = vadd.f32 %v1474_v19, %v1360_v37 }
 0x16f   :  { %1479 = vst [vmem:[#allocation7] sm:$0xff] %v1477_v52 }
 0x170   :  { %1480 = vst [vmem:[#allocation7 + $0x8] sm:$0xff] %v1478_v63 }
 0x171   :  { %1674 = shalt.err (!%p1671_p9)
}
 0x172   :  { %1490 = dma.vmem_to_hbm [thread:$0]  %s1488_s1, 256, %s2833_s2, [#allocation6]  }
 0x173   :  { %1685 = dma.done.wait [#allocation6], 256  }
 0x174   :  { %1686 = vsyncadd [#allocation6], 4294967040 }
 0x175   :  { %1494 = vsyncpa [#allocation5], 1 }
 0x176   :  { %1495 = vsyncpa [#allocation6], 1 }

</bundles_post_ra>
